<compile_context>
chip_gen: v6e
topology: v6e:2x2x1
jax: 0.10.0
libtpu: 0.0.40
codegen_flags: <defaults>
</compile_context>

<pallas_src>
import jax
import jax.numpy as jnp
from jax.experimental import pallas as pl

# --- model config (small, consistent with a tiny BERT) ---
B, S, H = 2, 8, 32
NUM_HEADS, HEAD_DIM = 4, 8
INTER = 64
NUM_LAYERS = 2
NUM_CLASSES = 3
PAD_CLASSES = 128          # lane-dense classifier/logits width
LN_EPS = 1e-12


def _layernorm(x, g, b):
    mu = jnp.mean(x, axis=-1, keepdims=True)
    var = jnp.mean((x - mu) ** 2, axis=-1, keepdims=True)
    return (x - mu) * jax.lax.rsqrt(var + LN_EPS) * g + b


def _gelu(x):
    # TODO(synk): HF BERT default is exact (erf-based) GELU; tanh approximation used here.
    return 0.5 * x * (1.0 + jnp.tanh(0.7978845608028654 * (x + 0.044715 * x * x * x)))


# ---------------------------------------------------------------------------
# Single fused kernel: all encoder layers + pooler + classifier + softmax.
# Activations live as a [B*S, H] slab; the layer loop is statically unrolled.
# ---------------------------------------------------------------------------
def bert_fused_kernel(x_ref, mask_ref, wqkv_ref, wo_ref, wi_ref, wf_ref,
                      vecs_ref, head_ref, probs_ref):
    x2 = x_ref[...]                    # [B*S, H]
    mask_bias = mask_ref[...]          # [NH*B, 1, S] additive bias (-10000 where masked)

    for l in range(NUM_LAYERS):        # static unroll over layers
        vecs = vecs_ref[l]             # [8, 3H] packed biases / LN params
        b_qkv = vecs[0:1, :]           # [1, 3H] (q-part pre-scaled by 1/sqrt(HD))
        b_o = vecs[1:2, :H]
        g1 = vecs[2:3, :H]
        b1 = vecs[3:4, :H]
        b_i = vecs[4:5, :INTER]
        b_f = vecs[5:6, :H]
        g2 = vecs[6:7, :H]
        b2 = vecs[7:8, :H]

        # --- fused QKV projection: one [B*S,H] x [H,3H] MXU push ---
        qkv = jnp.dot(x2, wqkv_ref[l], preferred_element_type=jnp.float32) + b_qkv

        # --- head-batched attention: merge (head, batch) into one leading dim ---
        def head_stack(part):
            off = part * H
            return jnp.concatenate(
                [qkv[:, off + h * HEAD_DIM: off + (h + 1) * HEAD_DIM]
                 .reshape(1, B * S, HEAD_DIM) for h in range(NUM_HEADS)],
                axis=0).reshape(NUM_HEADS * B, S, HEAD_DIM)

        q = head_stack(0)              # [NH*B, S, HD] (scale already folded in)
        k = head_stack(1)
        v = head_stack(2)

        s = jnp.einsum('bqd,bkd->bqk', q, k,
                       preferred_element_type=jnp.float32) + mask_bias
        s = s - jnp.max(s, axis=-1, keepdims=True)
        p = jnp.exp(s)
        p = p * pl.reciprocal(jnp.sum(p, axis=-1, keepdims=True), approx=True)
        ctx = jnp.einsum('bqk,bkd->bqd', p, v,
                         preferred_element_type=jnp.float32)        # [NH*B, S, HD]

        # --- re-assemble heads lane-contiguously, single Wo dot ---
        ctx3 = ctx.reshape(NUM_HEADS, B * S, HEAD_DIM)
        ctx_cat = jnp.concatenate([ctx3[h] for h in range(NUM_HEADS)], axis=1)  # [B*S, H]
        attn = jnp.dot(ctx_cat, wo_ref[l], preferred_element_type=jnp.float32) + b_o

        h1 = _layernorm(x2 + attn, g1, b1)
        inter = _gelu(jnp.dot(h1, wi_ref[l], preferred_element_type=jnp.float32) + b_i)
        ffn = jnp.dot(inter, wf_ref[l], preferred_element_type=jnp.float32) + b_f
        x2 = _layernorm(h1 + ffn, g2, b2)

    # --- pooler (CLS token) + classifier + exact softmax; dropout = identity (eval) ---
    cls = x2.reshape(B, S, H)[:, 0, :]                               # [B, H]
    head = head_ref[...]                                             # [H+1, 128+H]
    wc = head[:H, :PAD_CLASSES]                                      # [H, 128] (zero-padded)
    wp = head[:H, PAD_CLASSES:]                                      # [H, H]
    bc = head[H:, :PAD_CLASSES]                                      # [1, 128] (pads = -1e30)
    bp = head[H:, PAD_CLASSES:]                                      # [1, H]
    pooled = jnp.tanh(jnp.dot(cls, wp, preferred_element_type=jnp.float32) + bp)
    logits = jnp.dot(pooled, wc, preferred_element_type=jnp.float32) + bc   # [B, 128]
    m = jnp.max(logits, axis=1, keepdims=True)
    e = jnp.exp(logits - m)                                          # pad lanes -> exactly 0
    probs_ref[...] = e / jnp.sum(e, axis=1, keepdims=True)           # exact; rows sum to 1


# ---------------------------------------------------------------------------
# Wrapper: one pallas_call, no grid (everything resident in VMEM at this size).
# ---------------------------------------------------------------------------
def bert_wrapper_forward(embeddings, attention_mask, packed):
    # get_extended_attention_mask: (1 - mask) * -10000, broadcast over heads/queries.
    mask2 = (1.0 - attention_mask.astype(jnp.float32)) * -10000.0           # [B, S]
    mask_hb = jnp.broadcast_to(mask2[None, :, None, :],
                               (NUM_HEADS, B, 1, S)).reshape(NUM_HEADS * B, 1, S)
    x2 = embeddings.reshape(B * S, H)
    probs_pad = pl.pallas_call(
        bert_fused_kernel,
        out_shape=jax.ShapeDtypeStruct((B, PAD_CLASSES), jnp.float32),
    )(x2, mask_hb, packed['wqkv'], packed['wo'], packed['wi'], packed['wf'],
      packed['vecs'], packed['head'])
    return probs_pad[:, :NUM_CLASSES]


# ---------------------------------------------------------------------------
# Pure-JAX reference for correctness check (canonical per-layer weights).
# ---------------------------------------------------------------------------
def reference_forward(embeddings, attention_mask, layer_params, head_params):
    mask_bias = (1.0 - attention_mask) * -10000.0               # [B, S]
    x = embeddings
    for p in layer_params:
        q = x @ p['wq'] + p['bq']
        k = x @ p['wk'] + p['bk']
        v = x @ p['wv'] + p['bv']
        qh = q.reshape(B, S, NUM_HEADS, HEAD_DIM).transpose(0, 2, 1, 3)
        kh = k.reshape(B, S, NUM_HEADS, HEAD_DIM).transpose(0, 2, 1, 3)
        vh = v.reshape(B, S, NUM_HEADS, HEAD_DIM).transpose(0, 2, 1, 3)
        s = jnp.einsum('bhqd,bhkd->bhqk', qh, kh) / (HEAD_DIM ** 0.5)
        s = s + mask_bias[:, None, None, :]
        a = jax.nn.softmax(s, axis=-1)
        ctx = jnp.einsum('bhqk,bhkd->bhqd', a, vh).transpose(0, 2, 1, 3).reshape(B, S, H)
        attn_out = ctx @ p['wo'] + p['bo']
        h1 = _layernorm(x + attn_out, p['g1'], p['b1'])
        inter = _gelu(h1 @ p['wi'] + p['bi'])
        ffn = inter @ p['wf'] + p['bf']
        x = _layernorm(h1 + ffn, p['g2'], p['b2'])
    cls = x[:, 0, :]
    pooled = jnp.tanh(cls @ head_params['wp'] + head_params['bp'])
    logits = pooled @ head_params['wc'] + head_params['bc']
    return jax.nn.softmax(logits, axis=1)


# ---------------------------------------------------------------------------
# Deterministic synthetic parameters (canonical shapes) + kernel-layout packing.
# ---------------------------------------------------------------------------
def init_params(seed=0):
    key = jax.random.PRNGKey(seed)

    def dense(k, fin, fout):
        kw, kb = jax.random.split(k)
        w = jax.random.normal(kw, (fin, fout), jnp.float32) * 0.05
        b = jax.random.normal(kb, (1, fout), jnp.float32) * 0.05
        return w, b

    layers = []
    for l in range(NUM_LAYERS):
        ks = jax.random.split(jax.random.fold_in(key, l), 6)
        wq, bq = dense(ks[0], H, H)
        wk, bk = dense(ks[1], H, H)
        wv, bv = dense(ks[2], H, H)
        wo, bo = dense(ks[3], H, H)
        wi, bi = dense(ks[4], H, INTER)
        wf, bf = dense(ks[5], INTER, H)
        layers.append(dict(
            wq=wq, bq=bq, wk=wk, bk=bk, wv=wv, bv=bv, wo=wo, bo=bo,
            g1=jnp.ones((1, H), jnp.float32), b1=jnp.zeros((1, H), jnp.float32),
            wi=wi, bi=bi, wf=wf, bf=bf,
            g2=jnp.ones((1, H), jnp.float32), b2=jnp.zeros((1, H), jnp.float32)))
    khs = jax.random.split(jax.random.fold_in(key, 1000), 2)
    wp, bp = dense(khs[0], H, H)
    wc, bc = dense(khs[1], H, NUM_CLASSES)
    head = dict(wp=wp, bp=bp, wc=wc, bc=bc)
    return layers, head


def pack_params(layers, head):
    """Pack canonical params into the few VMEM slabs the fused kernel expects."""
    scale = 1.0 / (HEAD_DIM ** 0.5)
    w3 = 3 * H

    # Fused QKV weights [L, H, 3H]; fold attention scale into Wq (and bq below).
    wqkv = jnp.stack([jnp.concatenate([p['wq'] * scale, p['wk'], p['wv']], axis=1)
                      for p in layers], axis=0)
    wo = jnp.stack([p['wo'] for p in layers], axis=0)      # [L, H, H]
    wi = jnp.stack([p['wi'] for p in layers], axis=0)      # [L, H, INTER]
    wf = jnp.stack([p['wf'] for p in layers], axis=0)      # [L, INTER, H]

    def pad_row(v):
        return jnp.pad(v, ((0, 0), (0, w3 - v.shape[1])))

    vecs = jnp.stack([
        jnp.concatenate([
            jnp.concatenate([p['bq'] * scale, p['bk'], p['bv']], axis=1),  # row 0: bqkv
            pad_row(p['bo']), pad_row(p['g1']), pad_row(p['b1']),
            pad_row(p['bi']), pad_row(p['bf']), pad_row(p['g2']), pad_row(p['b2']),
        ], axis=0)
        for p in layers], axis=0)                          # [L, 8, 3H]

    # Head slab [H+1, 128+H]: cols 0:128 = classifier (zero-padded W, -1e30-padded b),
    # cols 128: = pooler.  Lane offsets 0 and 128 keep all in-kernel slices aligned.
    wc_pad = jnp.zeros((H, PAD_CLASSES), jnp.float32).at[:, :NUM_CLASSES].set(head['wc'])
    bc_pad = jnp.full((1, PAD_CLASSES), -1e30, jnp.float32).at[:, :NUM_CLASSES].set(head['bc'])
    head_slab = jnp.concatenate([
        jnp.concatenate([wc_pad, head['wp']], axis=1),     # [H, 128+H]
        jnp.concatenate([bc_pad, head['bp']], axis=1),     # [1, 128+H]
    ], axis=0)                                             # [H+1, 128+H]

    return dict(wqkv=wqkv, wo=wo, wi=wi, wf=wf, vecs=vecs, head=head_slab)


if __name__ == "__main__":
    key = jax.random.PRNGKey(0)
    k1, _ = jax.random.split(key)
    embeddings = jax.random.normal(k1, (B, S, H), jnp.float32)
    attention_mask = jnp.ones((B, S), jnp.float32).at[1, S - 2:].set(0.0)

    layer_params, head_params = init_params(0)
    packed = pack_params(layer_params, head_params)

    probs = bert_wrapper_forward(embeddings, attention_mask, packed)
    probs = jax.block_until_ready(probs)

    ref = reference_forward(embeddings, attention_mask, layer_params, head_params)
    assert probs.shape == (B, NUM_CLASSES)
    assert bool(jnp.allclose(jnp.sum(probs, axis=1), 1.0, atol=1e-5))
    # Tolerance accounts for the approximate (EUP) reciprocal in the attention softmax.
    assert bool(jnp.allclose(probs, ref, atol=2e-3, rtol=2e-3)), (probs, ref)

    print("KERNEL_OK")
</pallas_src>

<mosaic_0001>
module attributes {stable_mosaic.version = 11 : i64} {
  func.func @bert_fused_kernel(%arg0: memref<16x32xf32, #tpu.memory_space<vmem>>, %arg1: memref<8x1x8xf32, #tpu.memory_space<vmem>>, %arg2: memref<2x32x96xf32, #tpu.memory_space<vmem>>, %arg3: memref<2x32x32xf32, #tpu.memory_space<vmem>>, %arg4: memref<2x32x64xf32, #tpu.memory_space<vmem>>, %arg5: memref<2x64x32xf32, #tpu.memory_space<vmem>>, %arg6: memref<2x8x96xf32, #tpu.memory_space<vmem>>, %arg7: memref<33x160xf32, #tpu.memory_space<vmem>>, %arg8: memref<2x128xf32, #tpu.memory_space<vmem>>) attributes {dimension_semantics = [], scalar_prefetch = 0 : i64, scratch_operands = 0 : i64, tpu.core_type = #tpu.core_type<tc>} {
    %c0 = arith.constant 0 : index
    %c0_0 = arith.constant 0 : index
    %0 = vector.load %arg0[%c0, %c0_0] : memref<16x32xf32, #tpu.memory_space<vmem>>, vector<16x32xf32>
    %c0_1 = arith.constant 0 : index
    %c0_2 = arith.constant 0 : index
    %c0_3 = arith.constant 0 : index
    %1 = vector.load %arg1[%c0_1, %c0_2, %c0_3] : memref<8x1x8xf32, #tpu.memory_space<vmem>>, vector<8x1x8xf32>
    %c0_4 = arith.constant 0 : index
    %c0_5 = arith.constant 0 : index
    %c0_6 = arith.constant 0 : index
    %2 = vector.load %arg6[%c0_4, %c0_5, %c0_6] : memref<2x8x96xf32, #tpu.memory_space<vmem>>, vector<1x8x96xf32>
    %3 = vector.shape_cast %2 : vector<1x8x96xf32> to vector<8x96xf32>
    %4 = vector.extract_strided_slice %3 {offsets = [0, 0], sizes = [1, 96], strides = [1, 1]} : vector<8x96xf32> to vector<1x96xf32>
    %5 = vector.extract_strided_slice %3 {offsets = [1, 0], sizes = [1, 32], strides = [1, 1]} : vector<8x96xf32> to vector<1x32xf32>
    %6 = vector.extract_strided_slice %3 {offsets = [2, 0], sizes = [1, 32], strides = [1, 1]} : vector<8x96xf32> to vector<1x32xf32>
    %7 = vector.extract_strided_slice %3 {offsets = [3, 0], sizes = [1, 32], strides = [1, 1]} : vector<8x96xf32> to vector<1x32xf32>
    %8 = vector.extract_strided_slice %3 {offsets = [4, 0], sizes = [1, 64], strides = [1, 1]} : vector<8x96xf32> to vector<1x64xf32>
    %9 = vector.extract_strided_slice %3 {offsets = [5, 0], sizes = [1, 32], strides = [1, 1]} : vector<8x96xf32> to vector<1x32xf32>
    %10 = vector.extract_strided_slice %3 {offsets = [6, 0], sizes = [1, 32], strides = [1, 1]} : vector<8x96xf32> to vector<1x32xf32>
    %11 = vector.extract_strided_slice %3 {offsets = [7, 0], sizes = [1, 32], strides = [1, 1]} : vector<8x96xf32> to vector<1x32xf32>
    %c0_7 = arith.constant 0 : index
    %c0_8 = arith.constant 0 : index
    %c0_9 = arith.constant 0 : index
    %12 = vector.load %arg2[%c0_7, %c0_8, %c0_9] : memref<2x32x96xf32, #tpu.memory_space<vmem>>, vector<1x32x96xf32>
    %13 = vector.shape_cast %12 : vector<1x32x96xf32> to vector<32x96xf32>
    %cst = arith.constant dense<0.000000e+00> : vector<16x96xf32>
    %14 = tpu.matmul %0, %13, %cst {dimension_numbers = #tpu.dot_dimension_numbers<[1], [0], [0], [1], [0, 0, 1, 1], [], []>} : vector<16x32xf32>, vector<32x96xf32>, vector<16x96xf32> -> vector<16x96xf32>
    %15 = vector.broadcast %4 : vector<1x96xf32> to vector<16x96xf32>
    %16 = arith.addf %14, %15 : vector<16x96xf32>
    %17 = vector.extract_strided_slice %16 {offsets = [0, 0], sizes = [16, 8], strides = [1, 1]} : vector<16x96xf32> to vector<16x8xf32>
    %18 = vector.shape_cast %17 : vector<16x8xf32> to vector<1x16x8xf32>
    %19 = vector.extract_strided_slice %16 {offsets = [0, 8], sizes = [16, 8], strides = [1, 1]} : vector<16x96xf32> to vector<16x8xf32>
    %20 = vector.shape_cast %19 : vector<16x8xf32> to vector<1x16x8xf32>
    %21 = vector.extract_strided_slice %16 {offsets = [0, 16], sizes = [16, 8], strides = [1, 1]} : vector<16x96xf32> to vector<16x8xf32>
    %22 = vector.shape_cast %21 : vector<16x8xf32> to vector<1x16x8xf32>
    %23 = vector.extract_strided_slice %16 {offsets = [0, 24], sizes = [16, 8], strides = [1, 1]} : vector<16x96xf32> to vector<16x8xf32>
    %24 = vector.shape_cast %23 : vector<16x8xf32> to vector<1x16x8xf32>
    %25 = tpu.concatenate %18, %20, %22, %24 in 0 : vector<1x16x8xf32>, vector<1x16x8xf32>, vector<1x16x8xf32>, vector<1x16x8xf32> -> vector<4x16x8xf32>
    %26 = vector.shape_cast %25 : vector<4x16x8xf32> to vector<8x8x8xf32>
    %27 = vector.extract_strided_slice %16 {offsets = [0, 32], sizes = [16, 8], strides = [1, 1]} : vector<16x96xf32> to vector<16x8xf32>
    %28 = vector.shape_cast %27 : vector<16x8xf32> to vector<1x16x8xf32>
    %29 = vector.extract_strided_slice %16 {offsets = [0, 40], sizes = [16, 8], strides = [1, 1]} : vector<16x96xf32> to vector<16x8xf32>
    %30 = vector.shape_cast %29 : vector<16x8xf32> to vector<1x16x8xf32>
    %31 = vector.extract_strided_slice %16 {offsets = [0, 48], sizes = [16, 8], strides = [1, 1]} : vector<16x96xf32> to vector<16x8xf32>
    %32 = vector.shape_cast %31 : vector<16x8xf32> to vector<1x16x8xf32>
    %33 = vector.extract_strided_slice %16 {offsets = [0, 56], sizes = [16, 8], strides = [1, 1]} : vector<16x96xf32> to vector<16x8xf32>
    %34 = vector.shape_cast %33 : vector<16x8xf32> to vector<1x16x8xf32>
    %35 = tpu.concatenate %28, %30, %32, %34 in 0 : vector<1x16x8xf32>, vector<1x16x8xf32>, vector<1x16x8xf32>, vector<1x16x8xf32> -> vector<4x16x8xf32>
    %36 = vector.shape_cast %35 : vector<4x16x8xf32> to vector<8x8x8xf32>
    %37 = vector.extract_strided_slice %16 {offsets = [0, 64], sizes = [16, 8], strides = [1, 1]} : vector<16x96xf32> to vector<16x8xf32>
    %38 = vector.shape_cast %37 : vector<16x8xf32> to vector<1x16x8xf32>
    %39 = vector.extract_strided_slice %16 {offsets = [0, 72], sizes = [16, 8], strides = [1, 1]} : vector<16x96xf32> to vector<16x8xf32>
    %40 = vector.shape_cast %39 : vector<16x8xf32> to vector<1x16x8xf32>
    %41 = vector.extract_strided_slice %16 {offsets = [0, 80], sizes = [16, 8], strides = [1, 1]} : vector<16x96xf32> to vector<16x8xf32>
    %42 = vector.shape_cast %41 : vector<16x8xf32> to vector<1x16x8xf32>
    %43 = vector.extract_strided_slice %16 {offsets = [0, 88], sizes = [16, 8], strides = [1, 1]} : vector<16x96xf32> to vector<16x8xf32>
    %44 = vector.shape_cast %43 : vector<16x8xf32> to vector<1x16x8xf32>
    %45 = tpu.concatenate %38, %40, %42, %44 in 0 : vector<1x16x8xf32>, vector<1x16x8xf32>, vector<1x16x8xf32>, vector<1x16x8xf32> -> vector<4x16x8xf32>
    %46 = vector.shape_cast %45 : vector<4x16x8xf32> to vector<8x8x8xf32>
    "tpu.trace_start"() <{level = 10 : i32, message = "bqd,bkd->bqk"}> : () -> ()
    %cst_10 = arith.constant dense<0.000000e+00> : vector<8x8x8xf32>
    %47 = tpu.matmul %26, %36, %cst_10 {dimension_numbers = #tpu.dot_dimension_numbers<[2], [2], [1], [1], [0, 0, 0, 1, 1, 1], [0], [0]>} : vector<8x8x8xf32>, vector<8x8x8xf32>, vector<8x8x8xf32> -> vector<8x8x8xf32>
    "tpu.trace_stop"() : () -> ()
    %48 = vector.broadcast %1 : vector<8x1x8xf32> to vector<8x8x8xf32>
    %49 = arith.addf %47, %48 : vector<8x8x8xf32>
    %cst_11 = arith.constant dense<0xFF800000> : vector<8x8xf32>
    %50 = vector.multi_reduction <maximumf>, %49, %cst_11 [2] : vector<8x8x8xf32> to vector<8x8xf32>
    %51 = vector.shape_cast %50 : vector<8x8xf32> to vector<8x8x1xf32>
    %52 = vector.broadcast %51 : vector<8x8x1xf32> to vector<8x8x8xf32>
    %53 = arith.subf %49, %52 : vector<8x8x8xf32>
    %54 = math.exp %53 : vector<8x8x8xf32>
    %cst_12 = arith.constant dense<0.000000e+00> : vector<8x8xf32>
    %55 = vector.multi_reduction <add>, %54, %cst_12 [2] : vector<8x8x8xf32> to vector<8x8xf32>
    %56 = vector.shape_cast %55 : vector<8x8xf32> to vector<8x8x1xf32>
    %57 = tpu.reciprocal %56 {approx = true} : vector<8x8x1xf32> -> vector<8x8x1xf32>
    %58 = vector.broadcast %57 : vector<8x8x1xf32> to vector<8x8x8xf32>
    %59 = arith.mulf %54, %58 : vector<8x8x8xf32>
    "tpu.trace_start"() <{level = 10 : i32, message = "bqk,bkd->bqd"}> : () -> ()
    %cst_13 = arith.constant dense<0.000000e+00> : vector<8x8x8xf32>
    %60 = tpu.matmul %59, %46, %cst_13 {dimension_numbers = #tpu.dot_dimension_numbers<[2], [1], [1], [2], [0, 0, 0, 1, 1, 2], [0], [0]>} : vector<8x8x8xf32>, vector<8x8x8xf32>, vector<8x8x8xf32> -> vector<8x8x8xf32>
    "tpu.trace_stop"() : () -> ()
    %61 = vector.shape_cast %60 : vector<8x8x8xf32> to vector<4x16x8xf32>
    %62 = vector.extract_strided_slice %61 {offsets = [0, 0, 0], sizes = [1, 16, 8], strides = [1, 1, 1]} : vector<4x16x8xf32> to vector<1x16x8xf32>
    %63 = vector.shape_cast %62 : vector<1x16x8xf32> to vector<16x8xf32>
    %64 = vector.extract_strided_slice %61 {offsets = [1, 0, 0], sizes = [1, 16, 8], strides = [1, 1, 1]} : vector<4x16x8xf32> to vector<1x16x8xf32>
    %65 = vector.shape_cast %64 : vector<1x16x8xf32> to vector<16x8xf32>
    %66 = vector.extract_strided_slice %61 {offsets = [2, 0, 0], sizes = [1, 16, 8], strides = [1, 1, 1]} : vector<4x16x8xf32> to vector<1x16x8xf32>
    %67 = vector.shape_cast %66 : vector<1x16x8xf32> to vector<16x8xf32>
    %68 = vector.extract_strided_slice %61 {offsets = [3, 0, 0], sizes = [1, 16, 8], strides = [1, 1, 1]} : vector<4x16x8xf32> to vector<1x16x8xf32>
    %69 = vector.shape_cast %68 : vector<1x16x8xf32> to vector<16x8xf32>
    %70 = tpu.concatenate %63, %65, %67, %69 in 1 : vector<16x8xf32>, vector<16x8xf32>, vector<16x8xf32>, vector<16x8xf32> -> vector<16x32xf32>
    %c0_14 = arith.constant 0 : index
    %c0_15 = arith.constant 0 : index
    %c0_16 = arith.constant 0 : index
    %71 = vector.load %arg3[%c0_14, %c0_15, %c0_16] : memref<2x32x32xf32, #tpu.memory_space<vmem>>, vector<1x32x32xf32>
    %72 = vector.shape_cast %71 : vector<1x32x32xf32> to vector<32x32xf32>
    %cst_17 = arith.constant dense<0.000000e+00> : vector<16x32xf32>
    %73 = tpu.matmul %70, %72, %cst_17 {dimension_numbers = #tpu.dot_dimension_numbers<[1], [0], [0], [1], [0, 0, 1, 1], [], []>} : vector<16x32xf32>, vector<32x32xf32>, vector<16x32xf32> -> vector<16x32xf32>
    %74 = vector.broadcast %5 : vector<1x32xf32> to vector<16x32xf32>
    %75 = arith.addf %73, %74 : vector<16x32xf32>
    %76 = arith.addf %0, %75 : vector<16x32xf32>
    %cst_18 = arith.constant dense<0.000000e+00> : vector<16xf32>
    %77 = vector.multi_reduction <add>, %76, %cst_18 [1] : vector<16x32xf32> to vector<16xf32>
    %78 = vector.shape_cast %77 : vector<16xf32> to vector<16x1xf32>
    %cst_19 = arith.constant 3.200000e+01 : f32
    %79 = vector.broadcast %cst_19 : f32 to vector<16x1xf32>
    %80 = arith.divf %78, %79 : vector<16x1xf32>
    %81 = vector.broadcast %80 : vector<16x1xf32> to vector<16x32xf32>
    %82 = arith.subf %76, %81 : vector<16x32xf32>
    %83 = arith.mulf %82, %82 : vector<16x32xf32>
    %cst_20 = arith.constant dense<0.000000e+00> : vector<16xf32>
    %84 = vector.multi_reduction <add>, %83, %cst_20 [1] : vector<16x32xf32> to vector<16xf32>
    %85 = vector.shape_cast %84 : vector<16xf32> to vector<16x1xf32>
    %cst_21 = arith.constant 3.200000e+01 : f32
    %86 = vector.broadcast %cst_21 : f32 to vector<16x1xf32>
    %87 = arith.divf %85, %86 : vector<16x1xf32>
    %88 = vector.broadcast %80 : vector<16x1xf32> to vector<16x32xf32>
    %89 = arith.subf %76, %88 : vector<16x32xf32>
    %cst_22 = arith.constant 9.99999996E-13 : f32
    %90 = vector.broadcast %cst_22 : f32 to vector<16x1xf32>
    %91 = arith.addf %87, %90 : vector<16x1xf32>
    %92 = math.rsqrt %91 : vector<16x1xf32>
    %93 = vector.broadcast %92 : vector<16x1xf32> to vector<16x32xf32>
    %94 = arith.mulf %89, %93 : vector<16x32xf32>
    %95 = vector.broadcast %6 : vector<1x32xf32> to vector<16x32xf32>
    %96 = arith.mulf %94, %95 : vector<16x32xf32>
    %97 = vector.broadcast %7 : vector<1x32xf32> to vector<16x32xf32>
    %98 = arith.addf %96, %97 : vector<16x32xf32>
    %c0_23 = arith.constant 0 : index
    %c0_24 = arith.constant 0 : index
    %c0_25 = arith.constant 0 : index
    %99 = vector.load %arg4[%c0_23, %c0_24, %c0_25] : memref<2x32x64xf32, #tpu.memory_space<vmem>>, vector<1x32x64xf32>
    %100 = vector.shape_cast %99 : vector<1x32x64xf32> to vector<32x64xf32>
    %cst_26 = arith.constant dense<0.000000e+00> : vector<16x64xf32>
    %101 = tpu.matmul %98, %100, %cst_26 {dimension_numbers = #tpu.dot_dimension_numbers<[1], [0], [0], [1], [0, 0, 1, 1], [], []>} : vector<16x32xf32>, vector<32x64xf32>, vector<16x64xf32> -> vector<16x64xf32>
    %102 = vector.broadcast %8 : vector<1x64xf32> to vector<16x64xf32>
    %103 = arith.addf %101, %102 : vector<16x64xf32>
    %cst_27 = arith.constant 5.000000e-01 : f32
    %104 = vector.broadcast %cst_27 : f32 to vector<16x64xf32>
    %105 = arith.mulf %104, %103 : vector<16x64xf32>
    %cst_28 = arith.constant 4.471500e-02 : f32
    %106 = vector.broadcast %cst_28 : f32 to vector<16x64xf32>
    %107 = arith.mulf %106, %103 : vector<16x64xf32>
    %108 = arith.mulf %107, %103 : vector<16x64xf32>
    %109 = arith.mulf %108, %103 : vector<16x64xf32>
    %110 = arith.addf %103, %109 : vector<16x64xf32>
    %cst_29 = arith.constant 0.797884583 : f32
    %111 = vector.broadcast %cst_29 : f32 to vector<16x64xf32>
    %112 = arith.mulf %111, %110 : vector<16x64xf32>
    %113 = math.tanh %112 : vector<16x64xf32>
    %cst_30 = arith.constant 1.000000e+00 : f32
    %114 = vector.broadcast %cst_30 : f32 to vector<16x64xf32>
    %115 = arith.addf %114, %113 : vector<16x64xf32>
    %116 = arith.mulf %105, %115 : vector<16x64xf32>
    %c0_31 = arith.constant 0 : index
    %c0_32 = arith.constant 0 : index
    %c0_33 = arith.constant 0 : index
    %117 = vector.load %arg5[%c0_31, %c0_32, %c0_33] : memref<2x64x32xf32, #tpu.memory_space<vmem>>, vector<1x64x32xf32>
    %118 = vector.shape_cast %117 : vector<1x64x32xf32> to vector<64x32xf32>
    %cst_34 = arith.constant dense<0.000000e+00> : vector<16x32xf32>
    %119 = tpu.matmul %116, %118, %cst_34 {dimension_numbers = #tpu.dot_dimension_numbers<[1], [0], [0], [1], [0, 0, 1, 1], [], []>} : vector<16x64xf32>, vector<64x32xf32>, vector<16x32xf32> -> vector<16x32xf32>
    %120 = vector.broadcast %9 : vector<1x32xf32> to vector<16x32xf32>
    %121 = arith.addf %119, %120 : vector<16x32xf32>
    %122 = arith.addf %98, %121 : vector<16x32xf32>
    %cst_35 = arith.constant dense<0.000000e+00> : vector<16xf32>
    %123 = vector.multi_reduction <add>, %122, %cst_35 [1] : vector<16x32xf32> to vector<16xf32>
    %124 = vector.shape_cast %123 : vector<16xf32> to vector<16x1xf32>
    %cst_36 = arith.constant 3.200000e+01 : f32
    %125 = vector.broadcast %cst_36 : f32 to vector<16x1xf32>
    %126 = arith.divf %124, %125 : vector<16x1xf32>
    %127 = vector.broadcast %126 : vector<16x1xf32> to vector<16x32xf32>
    %128 = arith.subf %122, %127 : vector<16x32xf32>
    %129 = arith.mulf %128, %128 : vector<16x32xf32>
    %cst_37 = arith.constant dense<0.000000e+00> : vector<16xf32>
    %130 = vector.multi_reduction <add>, %129, %cst_37 [1] : vector<16x32xf32> to vector<16xf32>
    %131 = vector.shape_cast %130 : vector<16xf32> to vector<16x1xf32>
    %cst_38 = arith.constant 3.200000e+01 : f32
    %132 = vector.broadcast %cst_38 : f32 to vector<16x1xf32>
    %133 = arith.divf %131, %132 : vector<16x1xf32>
    %134 = vector.broadcast %126 : vector<16x1xf32> to vector<16x32xf32>
    %135 = arith.subf %122, %134 : vector<16x32xf32>
    %cst_39 = arith.constant 9.99999996E-13 : f32
    %136 = vector.broadcast %cst_39 : f32 to vector<16x1xf32>
    %137 = arith.addf %133, %136 : vector<16x1xf32>
    %138 = math.rsqrt %137 : vector<16x1xf32>
    %139 = vector.broadcast %138 : vector<16x1xf32> to vector<16x32xf32>
    %140 = arith.mulf %135, %139 : vector<16x32xf32>
    %141 = vector.broadcast %10 : vector<1x32xf32> to vector<16x32xf32>
    %142 = arith.mulf %140, %141 : vector<16x32xf32>
    %143 = vector.broadcast %11 : vector<1x32xf32> to vector<16x32xf32>
    %144 = arith.addf %142, %143 : vector<16x32xf32>
    %c1 = arith.constant 1 : index
    %c0_40 = arith.constant 0 : index
    %c0_41 = arith.constant 0 : index
    %145 = vector.load %arg6[%c1, %c0_40, %c0_41] : memref<2x8x96xf32, #tpu.memory_space<vmem>>, vector<1x8x96xf32>
    %146 = vector.shape_cast %145 : vector<1x8x96xf32> to vector<8x96xf32>
    %147 = vector.extract_strided_slice %146 {offsets = [0, 0], sizes = [1, 96], strides = [1, 1]} : vector<8x96xf32> to vector<1x96xf32>
    %148 = vector.extract_strided_slice %146 {offsets = [1, 0], sizes = [1, 32], strides = [1, 1]} : vector<8x96xf32> to vector<1x32xf32>
    %149 = vector.extract_strided_slice %146 {offsets = [2, 0], sizes = [1, 32], strides = [1, 1]} : vector<8x96xf32> to vector<1x32xf32>
    %150 = vector.extract_strided_slice %146 {offsets = [3, 0], sizes = [1, 32], strides = [1, 1]} : vector<8x96xf32> to vector<1x32xf32>
    %151 = vector.extract_strided_slice %146 {offsets = [4, 0], sizes = [1, 64], strides = [1, 1]} : vector<8x96xf32> to vector<1x64xf32>
    %152 = vector.extract_strided_slice %146 {offsets = [5, 0], sizes = [1, 32], strides = [1, 1]} : vector<8x96xf32> to vector<1x32xf32>
    %153 = vector.extract_strided_slice %146 {offsets = [6, 0], sizes = [1, 32], strides = [1, 1]} : vector<8x96xf32> to vector<1x32xf32>
    %154 = vector.extract_strided_slice %146 {offsets = [7, 0], sizes = [1, 32], strides = [1, 1]} : vector<8x96xf32> to vector<1x32xf32>
    %c1_42 = arith.constant 1 : index
    %c0_43 = arith.constant 0 : index
    %c0_44 = arith.constant 0 : index
    %155 = vector.load %arg2[%c1_42, %c0_43, %c0_44] : memref<2x32x96xf32, #tpu.memory_space<vmem>>, vector<1x32x96xf32>
    %156 = vector.shape_cast %155 : vector<1x32x96xf32> to vector<32x96xf32>
    %cst_45 = arith.constant dense<0.000000e+00> : vector<16x96xf32>
    %157 = tpu.matmul %144, %156, %cst_45 {dimension_numbers = #tpu.dot_dimension_numbers<[1], [0], [0], [1], [0, 0, 1, 1], [], []>} : vector<16x32xf32>, vector<32x96xf32>, vector<16x96xf32> -> vector<16x96xf32>
    %158 = vector.broadcast %147 : vector<1x96xf32> to vector<16x96xf32>
    %159 = arith.addf %157, %158 : vector<16x96xf32>
    %160 = vector.extract_strided_slice %159 {offsets = [0, 0], sizes = [16, 8], strides = [1, 1]} : vector<16x96xf32> to vector<16x8xf32>
    %161 = vector.shape_cast %160 : vector<16x8xf32> to vector<1x16x8xf32>
    %162 = vector.extract_strided_slice %159 {offsets = [0, 8], sizes = [16, 8], strides = [1, 1]} : vector<16x96xf32> to vector<16x8xf32>
    %163 = vector.shape_cast %162 : vector<16x8xf32> to vector<1x16x8xf32>
    %164 = vector.extract_strided_slice %159 {offsets = [0, 16], sizes = [16, 8], strides = [1, 1]} : vector<16x96xf32> to vector<16x8xf32>
    %165 = vector.shape_cast %164 : vector<16x8xf32> to vector<1x16x8xf32>
    %166 = vector.extract_strided_slice %159 {offsets = [0, 24], sizes = [16, 8], strides = [1, 1]} : vector<16x96xf32> to vector<16x8xf32>
    %167 = vector.shape_cast %166 : vector<16x8xf32> to vector<1x16x8xf32>
    %168 = tpu.concatenate %161, %163, %165, %167 in 0 : vector<1x16x8xf32>, vector<1x16x8xf32>, vector<1x16x8xf32>, vector<1x16x8xf32> -> vector<4x16x8xf32>
    %169 = vector.shape_cast %168 : vector<4x16x8xf32> to vector<8x8x8xf32>
    %170 = vector.extract_strided_slice %159 {offsets = [0, 32], sizes = [16, 8], strides = [1, 1]} : vector<16x96xf32> to vector<16x8xf32>
    %171 = vector.shape_cast %170 : vector<16x8xf32> to vector<1x16x8xf32>
    %172 = vector.extract_strided_slice %159 {offsets = [0, 40], sizes = [16, 8], strides = [1, 1]} : vector<16x96xf32> to vector<16x8xf32>
    %173 = vector.shape_cast %172 : vector<16x8xf32> to vector<1x16x8xf32>
    %174 = vector.extract_strided_slice %159 {offsets = [0, 48], sizes = [16, 8], strides = [1, 1]} : vector<16x96xf32> to vector<16x8xf32>
    %175 = vector.shape_cast %174 : vector<16x8xf32> to vector<1x16x8xf32>
    %176 = vector.extract_strided_slice %159 {offsets = [0, 56], sizes = [16, 8], strides = [1, 1]} : vector<16x96xf32> to vector<16x8xf32>
    %177 = vector.shape_cast %176 : vector<16x8xf32> to vector<1x16x8xf32>
    %178 = tpu.concatenate %171, %173, %175, %177 in 0 : vector<1x16x8xf32>, vector<1x16x8xf32>, vector<1x16x8xf32>, vector<1x16x8xf32> -> vector<4x16x8xf32>
    %179 = vector.shape_cast %178 : vector<4x16x8xf32> to vector<8x8x8xf32>
    %180 = vector.extract_strided_slice %159 {offsets = [0, 64], sizes = [16, 8], strides = [1, 1]} : vector<16x96xf32> to vector<16x8xf32>
    %181 = vector.shape_cast %180 : vector<16x8xf32> to vector<1x16x8xf32>
    %182 = vector.extract_strided_slice %159 {offsets = [0, 72], sizes = [16, 8], strides = [1, 1]} : vector<16x96xf32> to vector<16x8xf32>
    %183 = vector.shape_cast %182 : vector<16x8xf32> to vector<1x16x8xf32>
    %184 = vector.extract_strided_slice %159 {offsets = [0, 80], sizes = [16, 8], strides = [1, 1]} : vector<16x96xf32> to vector<16x8xf32>
    %185 = vector.shape_cast %184 : vector<16x8xf32> to vector<1x16x8xf32>
    %186 = vector.extract_strided_slice %159 {offsets = [0, 88], sizes = [16, 8], strides = [1, 1]} : vector<16x96xf32> to vector<16x8xf32>
    %187 = vector.shape_cast %186 : vector<16x8xf32> to vector<1x16x8xf32>
    %188 = tpu.concatenate %181, %183, %185, %187 in 0 : vector<1x16x8xf32>, vector<1x16x8xf32>, vector<1x16x8xf32>, vector<1x16x8xf32> -> vector<4x16x8xf32>
    %189 = vector.shape_cast %188 : vector<4x16x8xf32> to vector<8x8x8xf32>
    "tpu.trace_start"() <{level = 10 : i32, message = "bqd,bkd->bqk"}> : () -> ()
    %cst_46 = arith.constant dense<0.000000e+00> : vector<8x8x8xf32>
    %190 = tpu.matmul %169, %179, %cst_46 {dimension_numbers = #tpu.dot_dimension_numbers<[2], [2], [1], [1], [0, 0, 0, 1, 1, 1], [0], [0]>} : vector<8x8x8xf32>, vector<8x8x8xf32>, vector<8x8x8xf32> -> vector<8x8x8xf32>
    "tpu.trace_stop"() : () -> ()
    %191 = vector.broadcast %1 : vector<8x1x8xf32> to vector<8x8x8xf32>
    %192 = arith.addf %190, %191 : vector<8x8x8xf32>
    %cst_47 = arith.constant dense<0xFF800000> : vector<8x8xf32>
    %193 = vector.multi_reduction <maximumf>, %192, %cst_47 [2] : vector<8x8x8xf32> to vector<8x8xf32>
    %194 = vector.shape_cast %193 : vector<8x8xf32> to vector<8x8x1xf32>
    %195 = vector.broadcast %194 : vector<8x8x1xf32> to vector<8x8x8xf32>
    %196 = arith.subf %192, %195 : vector<8x8x8xf32>
    %197 = math.exp %196 : vector<8x8x8xf32>
    %cst_48 = arith.constant dense<0.000000e+00> : vector<8x8xf32>
    %198 = vector.multi_reduction <add>, %197, %cst_48 [2] : vector<8x8x8xf32> to vector<8x8xf32>
    %199 = vector.shape_cast %198 : vector<8x8xf32> to vector<8x8x1xf32>
    %200 = tpu.reciprocal %199 {approx = true} : vector<8x8x1xf32> -> vector<8x8x1xf32>
    %201 = vector.broadcast %200 : vector<8x8x1xf32> to vector<8x8x8xf32>
    %202 = arith.mulf %197, %201 : vector<8x8x8xf32>
    "tpu.trace_start"() <{level = 10 : i32, message = "bqk,bkd->bqd"}> : () -> ()
    %cst_49 = arith.constant dense<0.000000e+00> : vector<8x8x8xf32>
    %203 = tpu.matmul %202, %189, %cst_49 {dimension_numbers = #tpu.dot_dimension_numbers<[2], [1], [1], [2], [0, 0, 0, 1, 1, 2], [0], [0]>} : vector<8x8x8xf32>, vector<8x8x8xf32>, vector<8x8x8xf32> -> vector<8x8x8xf32>
    "tpu.trace_stop"() : () -> ()
    %204 = vector.shape_cast %203 : vector<8x8x8xf32> to vector<4x16x8xf32>
    %205 = vector.extract_strided_slice %204 {offsets = [0, 0, 0], sizes = [1, 16, 8], strides = [1, 1, 1]} : vector<4x16x8xf32> to vector<1x16x8xf32>
    %206 = vector.shape_cast %205 : vector<1x16x8xf32> to vector<16x8xf32>
    %207 = vector.extract_strided_slice %204 {offsets = [1, 0, 0], sizes = [1, 16, 8], strides = [1, 1, 1]} : vector<4x16x8xf32> to vector<1x16x8xf32>
    %208 = vector.shape_cast %207 : vector<1x16x8xf32> to vector<16x8xf32>
    %209 = vector.extract_strided_slice %204 {offsets = [2, 0, 0], sizes = [1, 16, 8], strides = [1, 1, 1]} : vector<4x16x8xf32> to vector<1x16x8xf32>
    %210 = vector.shape_cast %209 : vector<1x16x8xf32> to vector<16x8xf32>
    %211 = vector.extract_strided_slice %204 {offsets = [3, 0, 0], sizes = [1, 16, 8], strides = [1, 1, 1]} : vector<4x16x8xf32> to vector<1x16x8xf32>
    %212 = vector.shape_cast %211 : vector<1x16x8xf32> to vector<16x8xf32>
    %213 = tpu.concatenate %206, %208, %210, %212 in 1 : vector<16x8xf32>, vector<16x8xf32>, vector<16x8xf32>, vector<16x8xf32> -> vector<16x32xf32>
    %c1_50 = arith.constant 1 : index
    %c0_51 = arith.constant 0 : index
    %c0_52 = arith.constant 0 : index
    %214 = vector.load %arg3[%c1_50, %c0_51, %c0_52] : memref<2x32x32xf32, #tpu.memory_space<vmem>>, vector<1x32x32xf32>
    %215 = vector.shape_cast %214 : vector<1x32x32xf32> to vector<32x32xf32>
    %cst_53 = arith.constant dense<0.000000e+00> : vector<16x32xf32>
    %216 = tpu.matmul %213, %215, %cst_53 {dimension_numbers = #tpu.dot_dimension_numbers<[1], [0], [0], [1], [0, 0, 1, 1], [], []>} : vector<16x32xf32>, vector<32x32xf32>, vector<16x32xf32> -> vector<16x32xf32>
    %217 = vector.broadcast %148 : vector<1x32xf32> to vector<16x32xf32>
    %218 = arith.addf %216, %217 : vector<16x32xf32>
    %219 = arith.addf %144, %218 : vector<16x32xf32>
    %cst_54 = arith.constant dense<0.000000e+00> : vector<16xf32>
    %220 = vector.multi_reduction <add>, %219, %cst_54 [1] : vector<16x32xf32> to vector<16xf32>
    %221 = vector.shape_cast %220 : vector<16xf32> to vector<16x1xf32>
    %cst_55 = arith.constant 3.200000e+01 : f32
    %222 = vector.broadcast %cst_55 : f32 to vector<16x1xf32>
    %223 = arith.divf %221, %222 : vector<16x1xf32>
    %224 = vector.broadcast %223 : vector<16x1xf32> to vector<16x32xf32>
    %225 = arith.subf %219, %224 : vector<16x32xf32>
    %226 = arith.mulf %225, %225 : vector<16x32xf32>
    %cst_56 = arith.constant dense<0.000000e+00> : vector<16xf32>
    %227 = vector.multi_reduction <add>, %226, %cst_56 [1] : vector<16x32xf32> to vector<16xf32>
    %228 = vector.shape_cast %227 : vector<16xf32> to vector<16x1xf32>
    %cst_57 = arith.constant 3.200000e+01 : f32
    %229 = vector.broadcast %cst_57 : f32 to vector<16x1xf32>
    %230 = arith.divf %228, %229 : vector<16x1xf32>
    %231 = vector.broadcast %223 : vector<16x1xf32> to vector<16x32xf32>
    %232 = arith.subf %219, %231 : vector<16x32xf32>
    %cst_58 = arith.constant 9.99999996E-13 : f32
    %233 = vector.broadcast %cst_58 : f32 to vector<16x1xf32>
    %234 = arith.addf %230, %233 : vector<16x1xf32>
    %235 = math.rsqrt %234 : vector<16x1xf32>
    %236 = vector.broadcast %235 : vector<16x1xf32> to vector<16x32xf32>
    %237 = arith.mulf %232, %236 : vector<16x32xf32>
    %238 = vector.broadcast %149 : vector<1x32xf32> to vector<16x32xf32>
    %239 = arith.mulf %237, %238 : vector<16x32xf32>
    %240 = vector.broadcast %150 : vector<1x32xf32> to vector<16x32xf32>
    %241 = arith.addf %239, %240 : vector<16x32xf32>
    %c1_59 = arith.constant 1 : index
    %c0_60 = arith.constant 0 : index
    %c0_61 = arith.constant 0 : index
    %242 = vector.load %arg4[%c1_59, %c0_60, %c0_61] : memref<2x32x64xf32, #tpu.memory_space<vmem>>, vector<1x32x64xf32>
    %243 = vector.shape_cast %242 : vector<1x32x64xf32> to vector<32x64xf32>
    %cst_62 = arith.constant dense<0.000000e+00> : vector<16x64xf32>
    %244 = tpu.matmul %241, %243, %cst_62 {dimension_numbers = #tpu.dot_dimension_numbers<[1], [0], [0], [1], [0, 0, 1, 1], [], []>} : vector<16x32xf32>, vector<32x64xf32>, vector<16x64xf32> -> vector<16x64xf32>
    %245 = vector.broadcast %151 : vector<1x64xf32> to vector<16x64xf32>
    %246 = arith.addf %244, %245 : vector<16x64xf32>
    %cst_63 = arith.constant 5.000000e-01 : f32
    %247 = vector.broadcast %cst_63 : f32 to vector<16x64xf32>
    %248 = arith.mulf %247, %246 : vector<16x64xf32>
    %cst_64 = arith.constant 4.471500e-02 : f32
    %249 = vector.broadcast %cst_64 : f32 to vector<16x64xf32>
    %250 = arith.mulf %249, %246 : vector<16x64xf32>
    %251 = arith.mulf %250, %246 : vector<16x64xf32>
    %252 = arith.mulf %251, %246 : vector<16x64xf32>
    %253 = arith.addf %246, %252 : vector<16x64xf32>
    %cst_65 = arith.constant 0.797884583 : f32
    %254 = vector.broadcast %cst_65 : f32 to vector<16x64xf32>
    %255 = arith.mulf %254, %253 : vector<16x64xf32>
    %256 = math.tanh %255 : vector<16x64xf32>
    %cst_66 = arith.constant 1.000000e+00 : f32
    %257 = vector.broadcast %cst_66 : f32 to vector<16x64xf32>
    %258 = arith.addf %257, %256 : vector<16x64xf32>
    %259 = arith.mulf %248, %258 : vector<16x64xf32>
    %c1_67 = arith.constant 1 : index
    %c0_68 = arith.constant 0 : index
    %c0_69 = arith.constant 0 : index
    %260 = vector.load %arg5[%c1_67, %c0_68, %c0_69] : memref<2x64x32xf32, #tpu.memory_space<vmem>>, vector<1x64x32xf32>
    %261 = vector.shape_cast %260 : vector<1x64x32xf32> to vector<64x32xf32>
    %cst_70 = arith.constant dense<0.000000e+00> : vector<16x32xf32>
    %262 = tpu.matmul %259, %261, %cst_70 {dimension_numbers = #tpu.dot_dimension_numbers<[1], [0], [0], [1], [0, 0, 1, 1], [], []>} : vector<16x64xf32>, vector<64x32xf32>, vector<16x32xf32> -> vector<16x32xf32>
    %263 = vector.broadcast %152 : vector<1x32xf32> to vector<16x32xf32>
    %264 = arith.addf %262, %263 : vector<16x32xf32>
    %265 = arith.addf %241, %264 : vector<16x32xf32>
    %cst_71 = arith.constant dense<0.000000e+00> : vector<16xf32>
    %266 = vector.multi_reduction <add>, %265, %cst_71 [1] : vector<16x32xf32> to vector<16xf32>
    %267 = vector.shape_cast %266 : vector<16xf32> to vector<16x1xf32>
    %cst_72 = arith.constant 3.200000e+01 : f32
    %268 = vector.broadcast %cst_72 : f32 to vector<16x1xf32>
    %269 = arith.divf %267, %268 : vector<16x1xf32>
    %270 = vector.broadcast %269 : vector<16x1xf32> to vector<16x32xf32>
    %271 = arith.subf %265, %270 : vector<16x32xf32>
    %272 = arith.mulf %271, %271 : vector<16x32xf32>
    %cst_73 = arith.constant dense<0.000000e+00> : vector<16xf32>
    %273 = vector.multi_reduction <add>, %272, %cst_73 [1] : vector<16x32xf32> to vector<16xf32>
    %274 = vector.shape_cast %273 : vector<16xf32> to vector<16x1xf32>
    %cst_74 = arith.constant 3.200000e+01 : f32
    %275 = vector.broadcast %cst_74 : f32 to vector<16x1xf32>
    %276 = arith.divf %274, %275 : vector<16x1xf32>
    %277 = vector.broadcast %269 : vector<16x1xf32> to vector<16x32xf32>
    %278 = arith.subf %265, %277 : vector<16x32xf32>
    %cst_75 = arith.constant 9.99999996E-13 : f32
    %279 = vector.broadcast %cst_75 : f32 to vector<16x1xf32>
    %280 = arith.addf %276, %279 : vector<16x1xf32>
    %281 = math.rsqrt %280 : vector<16x1xf32>
    %282 = vector.broadcast %281 : vector<16x1xf32> to vector<16x32xf32>
    %283 = arith.mulf %278, %282 : vector<16x32xf32>
    %284 = vector.broadcast %153 : vector<1x32xf32> to vector<16x32xf32>
    %285 = arith.mulf %283, %284 : vector<16x32xf32>
    %286 = vector.broadcast %154 : vector<1x32xf32> to vector<16x32xf32>
    %287 = arith.addf %285, %286 : vector<16x32xf32>
    %288 = vector.shape_cast %287 : vector<16x32xf32> to vector<2x8x32xf32>
    %289 = vector.extract_strided_slice %288 {offsets = [0, 0, 0], sizes = [2, 1, 32], strides = [1, 1, 1]} : vector<2x8x32xf32> to vector<2x1x32xf32>
    %290 = vector.shape_cast %289 : vector<2x1x32xf32> to vector<2x32xf32>
    %c0_76 = arith.constant 0 : index
    %c0_77 = arith.constant 0 : index
    %291 = vector.load %arg7[%c0_76, %c0_77] : memref<33x160xf32, #tpu.memory_space<vmem>>, vector<33x160xf32>
    %292 = vector.extract_strided_slice %291 {offsets = [0, 0], sizes = [32, 128], strides = [1, 1]} : vector<33x160xf32> to vector<32x128xf32>
    %293 = vector.extract_strided_slice %291 {offsets = [0, 128], sizes = [32, 32], strides = [1, 1]} : vector<33x160xf32> to vector<32x32xf32>
    %294 = vector.extract_strided_slice %291 {offsets = [32, 0], sizes = [1, 128], strides = [1, 1]} : vector<33x160xf32> to vector<1x128xf32>
    %295 = vector.extract_strided_slice %291 {offsets = [32, 128], sizes = [1, 32], strides = [1, 1]} : vector<33x160xf32> to vector<1x32xf32>
    %cst_78 = arith.constant dense<0.000000e+00> : vector<2x32xf32>
    %296 = tpu.matmul %290, %293, %cst_78 {dimension_numbers = #tpu.dot_dimension_numbers<[1], [0], [0], [1], [0, 0, 1, 1], [], []>} : vector<2x32xf32>, vector<32x32xf32>, vector<2x32xf32> -> vector<2x32xf32>
    %297 = vector.broadcast %295 : vector<1x32xf32> to vector<2x32xf32>
    %298 = arith.addf %296, %297 : vector<2x32xf32>
    %299 = math.tanh %298 : vector<2x32xf32>
    %cst_79 = arith.constant dense<0.000000e+00> : vector<2x128xf32>
    %300 = tpu.matmul %299, %292, %cst_79 {dimension_numbers = #tpu.dot_dimension_numbers<[1], [0], [0], [1], [0, 0, 1, 1], [], []>} : vector<2x32xf32>, vector<32x128xf32>, vector<2x128xf32> -> vector<2x128xf32>
    %301 = vector.broadcast %294 : vector<1x128xf32> to vector<2x128xf32>
    %302 = arith.addf %300, %301 : vector<2x128xf32>
    %cst_80 = arith.constant dense<0xFF800000> : vector<2xf32>
    %303 = vector.multi_reduction <maximumf>, %302, %cst_80 [1] : vector<2x128xf32> to vector<2xf32>
    %304 = vector.shape_cast %303 : vector<2xf32> to vector<2x1xf32>
    %305 = vector.broadcast %304 : vector<2x1xf32> to vector<2x128xf32>
    %306 = arith.subf %302, %305 : vector<2x128xf32>
    %307 = math.exp %306 : vector<2x128xf32>
    %cst_81 = arith.constant dense<0.000000e+00> : vector<2xf32>
    %308 = vector.multi_reduction <add>, %307, %cst_81 [1] : vector<2x128xf32> to vector<2xf32>
    %309 = vector.shape_cast %308 : vector<2xf32> to vector<2x1xf32>
    %310 = vector.broadcast %309 : vector<2x1xf32> to vector<2x128xf32>
    %311 = arith.divf %307, %310 : vector<2x128xf32>
    %c0_82 = arith.constant 0 : index
    %c0_83 = arith.constant 0 : index
    %312 = vector.load %arg8[%c0_82, %c0_83] : memref<2x128xf32, #tpu.memory_space<vmem>>, vector<2x128xf32>
    tpu.vector_store %arg8[%c0_82, %c0_83], %311 {strides = array<i32>} : memref<2x128xf32, #tpu.memory_space<vmem>>, vector<2x128xf32>,
    return
  }
}

</mosaic_0001>

<bundles_post_ra>
// kernel: tpu_custom_call.1
= control target key start
LH: loop header
LB: loop body
LE: loop exit
PB: predicated region body
PF: predicated region fallthrough
CT: control target
= control target key end

     0   :  { %13 = vsyncpa [#allocation3], 0  ;;  %s5362_s0 = inlined_call_operand.vmem [shape: f32[16,32], index: 0, kind: input, shape index: {}]   ;;  %s5363_s1 = inlined_call_operand.vmem [shape: f32[8,1,8], index: 1, kind: input, shape index: {}]   ;;  %s5364_s2 = inlined_call_operand.vmem [shape: f32[2,32,96], index: 2, kind: input, shape index: {}]   ;;  %s5365_s3 = inlined_call_operand.hbm [shape: f32[2,32,32], index: 3, kind: input, shape index: {}]   ;;  %s5366_s4 = inlined_call_operand.hbm [shape: f32[2,32,64], index: 4, kind: input, shape index: {}]   ;;  %s5367_s5 = inlined_call_operand.vmem [shape: f32[2,64,32], index: 5, kind: input, shape index: {}]   ;;  %s5368_s6 = inlined_call_operand.vmem [shape: f32[2,8,96], index: 6, kind: input, shape index: {}]   ;;  %s5369_s7 = inlined_call_operand.vmem [shape: f32[33,160], index: 7, kind: input, shape index: {}]   ;;  %s5370_s8 = inlined_call_operand.hbm [shape: f32[2,128], index: 8, kind: output, shape index: {}]  }
   0x1   :  { %14 = vsyncpa [#allocation6], 0 }
   0x2   :  { %15 = vsyncpa [#allocation4], 0  ;;  %s4618_s27 = smov [#allocation2]  }
   0x3   :  { %s27_s28 = sshll.u32 %s4618_s27, 4  ;;  %s28_s28 = int_to_ptr.vmem [resolvable:$true] %s27_s28 }
   0x4   :  { %s4560_s29 = scalar_lea.vmem %s28_s28, 1024  ;;  %p4565_p1 = scmp.lt.s32.totalorder %s28_s28, %s28_s28 }
   0x5   :  { %p4561_p0 = scmp.ne.s32.totalorder %s28_s28, %s4560_s29  ;;  %p4566_p2 = scmp.lt.s32.totalorder %s4560_s29, %s4560_s29 }
   0x7   :  { %p4567_p3 = por %p4566_p2, %p4565_p1 }
   0x9   :  { %p4568_p4 = pnand %p4567_p3, %p4561_p0 }
   0xb   :  { %4571 = shalt.err (!%p4568_p4)
}
   0xc   :  { %s4619_s30 = smov 128   ;;  %s4620_s9 = smov 8  }
   0xd   :  { %33 = dma.hbm_to_vmem [thread:$0]  %s5365_s3, 1024, %s28_s28, [#allocation3], %s4619_s30, %s4619_s30, %s4620_s9  }
   0xe   :  { %s4621_s12 = smov [#allocation5]  }
   0xf   :  { %s39_s13 = sshll.u32 %s4621_s12, 4  ;;  %s40_s13 = int_to_ptr.vmem [resolvable:$true] %s39_s13 }
  0x10   :  { %s4580_s14 = scalar_lea.vmem %s40_s13, 1024  ;;  %p4585_p6 = scmp.lt.s32.totalorder %s40_s13, %s40_s13 }
  0x11   :  { %p4581_p5 = scmp.ne.s32.totalorder %s40_s13, %s4580_s14  ;;  %p4586_p7 = scmp.lt.s32.totalorder %s4580_s14, %s4580_s14 }
  0x13   :  { %p4587_p8 = por %p4586_p7, %p4585_p6 }
  0x15   :  { %p4588_p9 = pnand %p4587_p8, %p4581_p5 }
  0x17   :  { %4591 = shalt.err (!%p4588_p9)
}
  0x18   :  { %45 = dma.hbm_to_vmem [thread:$0]  %s5366_s4, 1024, %s40_s13, [#allocation6], %s4619_s30, %s4619_s30, %s4620_s9  }
  0x19   :  { %4612 = dma.done.wait [#allocation3], 1024  }
  0x1a   :  { %4613 = vsyncadd [#allocation3], 4294966272 }
  0x1b   :  { %4614 = dma.done.wait [#allocation6], 1024  }
  0x1c   :  { %4615 = vsyncadd [#allocation6], 4294966272  ;;  %vm77_vm0 = vcmask 261120   ;;  %v72_v0 = vld [vmem:[%s5364_s2 + $0x18] sm:$0xff]  ;;  %v71_v1 = vld [vmem:[%s5364_s2 + $0x10] sm:$0xff]  ;;  %v73_v6 = vlaneseq  ;;  %v4622_v12 = vmov 0.0  }
  0x1d   :  { %4158 = vmatprep.subr.mxu0 %v72_v0  ;;  %v4694_v2 = vld [vmem:[%s5362_s0] sm:$0xff]  ;;  %v70_v3 = vld [vmem:[%s5364_s2 + $0x8] sm:$0xff]  ;;  %4169 = vmatprep.subr.mxu1 %v4622_v12  ;;  %s4624_s29 = smov 120   ;;  %vm4625_vm1 = vmmov 0   ;;  %s4626_s30 = smov 104   ;;  %vm223_vm2 = vcmask 64512  }
  0x1e   :  { %4159 = vmatpush3.msra.mxu0 %v72_v0  ;;  %4166 = vmatprep.mubr.msk.f32.mxu0 %vm77_vm0, %v4694_v2  ;;  %v69_v4 = vld [vmem:[%s5364_s2] sm:$0xff]  ;;  %v4707_v5 = vld [vmem:[%s5362_s0 + $0x8] sm:$0xff]  ;;  %v4711_v7 = vshrl.u32 %v73_v6, 7  ;;  %s4623_s0 = smov 112   ;;  %s4627_s10 = smov 96   ;;  %vm1552_vm3 = vcmask 130048  }
  0x1f   :  { %4160 = vmatprep.subr.mxu0 %v71_v1  ;;  %v4717_v9 = vld [vmem:[%s5368_s6] sm:$0xff]  ;;  %4171 = vmatprep.mubr.msk.f32.mxu1 %vm4625_vm1, %v4622_v12  ;;  %s4628_s25 = smov 64   ;;  %s4630_s26 = smov 24   ;;  %vm1555_vm4 = vcmask 195584   ;;  %vm1807_vm5 = vcmask 523264   ;;  %vm3758_vm6 = vcmask 1041409  }
  0x20   :  { %4161 = vmatpush3.msra.mxu0 %v71_v1  ;;  %v75_v8 = vsub.s32 0, %v4711_v7  ;;  %v4823_v30 = vld [vmem:[%s5363_s1] ss:$0 sm:$0xff]  ;;  %v4829_v34 = vld [vmem:[%s5363_s1 + $0x1] ss:$0 sm:$0xff]  ;;  %vm3910_vm7 = vcmask 1041408  }
  0x21   :  { %4162 = vmatprep.subr.mxu0 %v70_v3  ;;  %v4837_v40 = vld [vmem:[%s5363_s1 + $0x2] ss:$0 sm:$0xff]  ;;  %v4843_v44 = vld [vmem:[%s5363_s1 + $0x3] ss:$0 sm:$0xff]  ;;  %v4848_v45 = vld [vmem:[%s5363_s1 + $0x4] ss:$0 sm:$0xff] }
  0x22   :  { %4163 = vmatpush3.msra.mxu0 %v70_v3  ;;  %v76_v11 = vrot.slane %v4717_v9, %v75_v8  ;;  %v4856_v53 = vld [vmem:[%s5363_s1 + $0x5] ss:$0 sm:$0xff]  ;;  %v4861_v54 = vld [vmem:[%s5363_s1 + $0x6] ss:$0 sm:$0xff]  ;;  %v4870_v63 = vld [vmem:[%s5363_s1 + $0x7] ss:$0 sm:$0xff] }
  0x23   :  { %4164 = vmatprep.subr.mxu0 %v69_v4  ;;  %s4629_s1 = smov 16  }
  0x24   :  { %4165 = vmatpush3.msra.mxu0 %v69_v4 }
  0x25   :  { %4167 = vmatmul.mubr.msk.f32.vlgmr.msra.gmra.mxu0 %vm77_vm0, %v4707_v5  ;;  %4179 = vmatprep.subr.mxu0 %v4622_v12 }
  0x26   :  { %4181 = vmatprep.mubr.msk.f32.mxu0 %vm4625_vm1, %v4622_v12 }
  0xe5   :  { %v4168_v10 = vpop.f32.mrf.mxu0 }
  0xe6   :  { %v4734_v15 = vadd.f32 %v4168_v10, %v76_v11 }
  0xe7   :  { %v150_v13 = vpop.f32.mrf.mxu0 }
  0xe8   :  { %v4724_v14 = vadd.f32 %v150_v13, %v76_v11 }
  0xea   :  { %165 = vrot.lane.b32.xlu1 %v4724_v14, %s4623_s0  ;;  %161 = vrot.lane.b32.xlu0 %v4724_v14, %s4624_s29 }
  0xee   :  { %167 = vrot.lane.b32.xlu1 %v4734_v15, %s4623_s0  ;;  %163 = vrot.lane.b32.xlu0 %v4734_v15, %s4624_s29 }
  0xf2   :  { %171 = vrot.lane.b32.xlu1 %v4734_v15, %s4626_s30  ;;  %169 = vrot.lane.b32.xlu0 %v4724_v14, %s4626_s30 }
  0xf6   :  { %298 = vrot.lane.b32.xlu1 %v4734_v15, %s4627_s10  ;;  %221 = vrot.lane.b32.xlu0 %v4724_v14, %s4627_s10 }
 0x15c   :  { %v4748_v16 = vpop.permute.xlu1 %165  ;;  %v4750_v17 = vpop.permute.xlu0 %161 }
 0x15d   :  { %374 = vrot.lane.b32.xlu0 %v4750_v17, %s4627_s10 }
 0x160   :  { %v4754_v18 = vpop.permute.xlu1 %167  ;;  %v4756_v19 = vpop.permute.xlu0 %163 }
 0x161   :  { %526 = vrot.lane.b32.xlu0 %v4748_v16, %s4627_s10  ;;  %450 = vrot.lane.b32.xlu1 %v4756_v19, %s4627_s10 }
 0x164   :  { %v4762_v20 = vpop.permute.xlu0 %169  ;;  %v4768_v21 = vpop.permute.xlu1 %171 }
 0x165   :  { %602 = vrot.lane.b32.xlu1 %v4754_v18, %s4627_s10  ;;  %678 = vrot.lane.b32.xlu0 %v4762_v20, %s4627_s10 }
 0x168   :  { %v222_v22 = vpop.permute.xlu0 %221  ;;  %v299_v23 = vpop.permute.xlu1 %298 }
 0x169   :  { %754 = vrot.lane.b32.xlu1 %v4768_v21, %s4627_s10  ;;  %4170 = vmatpush3.xpose.msk.msra.mxu1 %vm223_vm2, %v222_v22 }
 0x16a   :  { %4174 = vmatprep.subr.mxu1 %v4622_v12 }
 0x16c   :  { %4172 = vmatmul.mubr.msk.f32.vlgmr.msra.gmra.mxu1 %vm223_vm2, %v4724_v14 }
 0x16d   :  { %4175 = vmatpush3.xpose.msk.msra.mxu1 %vm223_vm2, %v299_v23  ;;  %4176 = vmatprep.mubr.msk.f32.mxu1 %vm4625_vm1, %v4622_v12 }
 0x16e   :  { %4184 = vmatprep.subr.mxu1 %v4622_v12 }
 0x170   :  { %4177 = vmatmul.mubr.msk.f32.vlgmr.msra.gmra.mxu1 %vm223_vm2, %v4734_v15 }
 0x171   :  { %4186 = vmatprep.mubr.msk.f32.mxu1 %vm4625_vm1, %v4622_v12 }
 0x1cf   :  { %v375_v24 = vpop.permute.xlu0 %374 }
 0x1d0   :  { %4180 = vmatpush3.xpose.msk.msra.mxu0 %vm223_vm2, %v375_v24 }
 0x1d1   :  { %4189 = vmatprep.subr.mxu0 %v4622_v12 }
 0x1d3   :  { %v451_v25 = vpop.permute.xlu1 %450  ;;  %4182 = vmatmul.mubr.msk.f32.vlgmr.msra.gmra.mxu0 %vm223_vm2, %v4750_v17  ;;  %v527_v26 = vpop.permute.xlu0 %526 }
 0x1d4   :  { %4185 = vmatpush3.xpose.msk.msra.mxu1 %vm223_vm2, %v451_v25  ;;  %4190 = vmatpush3.xpose.msk.msra.mxu0 %vm223_vm2, %v527_v26 }
 0x1d5   :  { %4191 = vmatprep.mubr.msk.f32.mxu0 %vm4625_vm1, %v4622_v12  ;;  %4194 = vmatprep.subr.mxu1 %v4622_v12 }
 0x1d6   :  { %4199 = vmatprep.subr.mxu0 %v4622_v12 }
 0x1d7   :  { %v603_v27 = vpop.permute.xlu1 %602  ;;  %4187 = vmatmul.mubr.msk.f32.vlgmr.msra.gmra.mxu1 %vm223_vm2, %v4756_v19  ;;  %4192 = vmatmul.mubr.msk.f32.vlgmr.msra.gmra.mxu0 %vm223_vm2, %v4748_v16  ;;  %v679_v28 = vpop.permute.xlu0 %678 }
 0x1d8   :  { %4195 = vmatpush3.xpose.msk.msra.mxu1 %vm223_vm2, %v603_v27  ;;  %4200 = vmatpush3.xpose.msk.msra.mxu0 %vm223_vm2, %v679_v28 }
 0x1d9   :  { %4196 = vmatprep.mubr.msk.f32.mxu1 %vm4625_vm1, %v4622_v12  ;;  %4201 = vmatprep.mubr.msk.f32.mxu0 %vm4625_vm1, %v4622_v12 }
 0x1da   :  { %4204 = vmatprep.subr.mxu1 %v4622_v12  ;;  %4209 = vmatprep.subr.mxu0 %v4622_v12 }
 0x1db   :  { %v755_v29 = vpop.permute.xlu1 %754  ;;  %4197 = vmatmul.mubr.msk.f32.vlgmr.msra.gmra.mxu1 %vm223_vm2, %v4754_v18  ;;  %4202 = vmatmul.mubr.msk.f32.vlgmr.msra.gmra.mxu0 %vm223_vm2, %v4762_v20 }
 0x1dc   :  { %4205 = vmatpush3.xpose.msk.msra.mxu1 %vm223_vm2, %v755_v29  ;;  %4206 = vmatprep.mubr.msk.f32.mxu1 %vm4625_vm1, %v4622_v12 }
 0x1dd   :  { %4214 = vmatprep.subr.mxu1 %v4622_v12  ;;  %4211 = vmatprep.mubr.msk.f32.mxu0 %vm4625_vm1, %v4622_v12 }
 0x1df   :  { %4207 = vmatmul.mubr.msk.f32.vlgmr.msra.gmra.mxu1 %vm223_vm2, %v4768_v21 }
 0x1e0   :  { %4216 = vmatprep.mubr.msk.f32.mxu1 %vm4625_vm1, %v4622_v12 }
 0x22c   :  { %v294_v31 = vpop.f32.mrf.mxu1 }
 0x22d   :  { %v295_v32 = vadd.f32 %v4823_v30, %v294_v31 }
 0x22e   :  { %v4173_v33 = vpop.f32.mrf.mxu1 }
 0x22f   :  { %v830_v35 = vsel %vm223_vm2, %v295_v32, -inf }
 0x230   :  { %831 = vmax.xlane.f32.xlu0 %v830_v35  ;;  %v370_v36 = vpop.f32.mrf.mxu1 }
 0x231   :  { %v371_v37 = vadd.f32 %v4829_v34, %v370_v36 }
 0x232   :  { %v4178_v38 = vpop.f32.mrf.mxu1 }
 0x233   :  { %v833_v39 = vsel %vm223_vm2, %v371_v37, -inf }
 0x234   :  { %834 = vmax.xlane.f32.xlu1 %v833_v39 }
 0x293   :  { %v446_v41 = vpop.f32.mrf.mxu0 }
 0x294   :  { %v447_v42 = vadd.f32 %v4837_v40, %v446_v41 }
 0x295   :  { %v4183_v43 = vpop.f32.mrf.mxu0 }
 0x296   :  { %v836_v46 = vsel %vm223_vm2, %v447_v42, -inf }
 0x297   :  { %v522_v47 = vpop.f32.mrf.mxu1  ;;  %837 = vmax.xlane.f32.xlu0 %v836_v46  ;;  %v598_v48 = vpop.f32.mrf.mxu0 }
 0x298   :  { %v523_v49 = vadd.f32 %v4843_v44, %v522_v47  ;;  %v599_v50 = vadd.f32 %v4848_v45, %v598_v48 }
 0x299   :  { %v4188_v51 = vpop.f32.mrf.mxu1  ;;  %v4193_v52 = vpop.f32.mrf.mxu0 }
 0x29a   :  { %v839_v55 = vsel %vm223_vm2, %v523_v49, -inf  ;;  %v842_v56 = vsel %vm223_vm2, %v599_v50, -inf }
 0x29b   :  { %v674_v57 = vpop.f32.mrf.mxu1  ;;  %840 = vmax.xlane.f32.xlu0 %v839_v55  ;;  %843 = vmax.xlane.f32.xlu1 %v842_v56  ;;  %v750_v58 = vpop.f32.mrf.mxu0 }
 0x29c   :  { %v675_v59 = vadd.f32 %v4856_v53, %v674_v57  ;;  %v751_v60 = vadd.f32 %v4861_v54, %v750_v58 }
 0x29d   :  { %v4198_v61 = vpop.f32.mrf.mxu1  ;;  %v4203_v62 = vpop.f32.mrf.mxu0 }
 0x29e   :  { %v845_v0 = vsel %vm223_vm2, %v675_v59, -inf  ;;  %v848_v1 = vsel %vm223_vm2, %v751_v60, -inf }
 0x29f   :  { %v826_v3 = vpop.f32.mrf.mxu1  ;;  %846 = vmax.xlane.f32.xlu0 %v845_v0  ;;  %849 = vmax.xlane.f32.xlu1 %v848_v1 }
 0x2a0   :  { %v827_v4 = vadd.f32 %v4870_v63, %v826_v3 }
 0x2a1   :  { %v4208_v6 = vpop.f32.mrf.mxu1 }
 0x2a2   :  { %v851_v10 = vsel %vm223_vm2, %v827_v4, -inf }
 0x2a3   :  { %852 = vmax.xlane.f32.xlu0 %v851_v10 }
 0x2b0   :  { %918 = vrot.lane.b32.xlu1 %v4724_v14, %s4628_s25 }
 0x2b4   :  { %1070 = vrot.lane.b32.xlu1 %v4750_v17, %s4628_s25 }
 0x2b8   :  { %1146 = vrot.lane.b32.xlu1 %v4756_v19, %s4628_s25 }
 0x2b9   :  { %994 = vrot.lane.b32.xlu0 %v4734_v15, %s4628_s25  ;;  %v832_v22 = vpop.xlane.xlu0 %831 }
 0x2ba   :  { %v854_v23 = vsub.f32 %v295_v32, %v832_v22 }
 0x2bc   :  { %1298 = vrot.lane.b32.xlu1 %v4754_v18, %s4628_s25  ;;  %v862_v24 = vmul.f32 1.442695, %v854_v23 }
 0x2bd   :  { %1222 = vrot.lane.b32.xlu0 %v4748_v16, %s4628_s25  ;;  %v835_v11 = vpop.xlane.xlu1 %834 }
 0x2be   :  { %v855_v13 = vsub.f32 %v371_v37, %v835_v11 }
 0x2c0   :  { %v864_v14 = vmul.f32 1.442695, %v855_v13 }
 0x2c2   :  { %4458 = vpow2.f32 %v864_v14 }
 0x2c3   :  { %4460 = vpow2.f32 %v862_v24 }
 0x2cf   :  { %v4888_v17 = vpop.eup %4458 }
 0x2d0   :  { %v881_v19 = vsel %vm223_vm2, %v4888_v17, 0.0  ;;  %v4892_v15 = vpop.eup %4460 }
 0x2d1   :  { %v878_v18 = vsel %vm223_vm2, %v4892_v15, 0.0 }
 0x2dc   :  { %882 = vadd.xlane.f32.xlu0 %v881_v19 }
 0x2e0   :  { %879 = vadd.xlane.f32.xlu1 %v878_v18 }
 0x320   :  { %v838_v16 = vpop.xlane.xlu0 %837 }
 0x321   :  { %v856_v25 = vsub.f32 %v447_v42, %v838_v16 }
 0x323   :  { %v866_v26 = vmul.f32 1.442695, %v856_v25 }
 0x324   :  { %v844_v27 = vpop.xlane.xlu1 %843  ;;  %v841_v28 = vpop.xlane.xlu0 %840 }
 0x325   :  { %4462 = vpow2.f32 %v866_v26  ;;  %v858_v29 = vsub.f32 %v599_v50, %v844_v27  ;;  %v857_v31 = vsub.f32 %v523_v49, %v841_v28 }
 0x327   :  { %v870_v32 = vmul.f32 1.442695, %v858_v29  ;;  %v868_v33 = vmul.f32 1.442695, %v857_v31 }
 0x328   :  { %v850_v35 = vpop.xlane.xlu1 %849  ;;  %v847_v36 = vpop.xlane.xlu0 %846 }
 0x329   :  { %4464 = vpow2.f32 %v870_v32  ;;  %v860_v37 = vsub.f32 %v751_v60, %v850_v35  ;;  %v859_v38 = vsub.f32 %v675_v59, %v847_v36 }
 0x32a   :  { %4466 = vpow2.f32 %v868_v33 }
 0x32b   :  { %v874_v39 = vmul.f32 1.442695, %v860_v37  ;;  %v872_v41 = vmul.f32 1.442695, %v859_v38 }
 0x32c   :  { %v919_v43 = vpop.permute.xlu1 %918  ;;  %v853_v46 = vpop.xlane.xlu0 %852 }
 0x32d   :  { %4468 = vpow2.f32 %v874_v39  ;;  %v861_v42 = vsub.f32 %v827_v4, %v853_v46  ;;  %4210 = vmatpush3.msra.mxu0 %v919_v43  ;;  %v1561_v46 = vld [vmem:[#allocation2 + $0x18] sm:$0xff] }
 0x32e   :  { %4470 = vpow2.f32 %v872_v41  ;;  %4219 = vmatprep.subr.mxu0 %v4622_v12 }
 0x32f   :  { %v876_v47 = vmul.f32 1.442695, %v861_v42  ;;  %v1560_v42 = vld [vmem:[#allocation2 + $0x10] sm:$0xff] }
 0x330   :  { %v995_v48 = vpop.permute.xlu0 %994  ;;  %v1071_v0 = vpop.permute.xlu1 %1070 }
 0x331   :  { %4472 = vpow2.f32 %v876_v47  ;;  %4215 = vmatpush3.msra.mxu1 %v995_v48  ;;  %v1559_v47 = vld [vmem:[#allocation2 + $0x8] sm:$0xff] }
 0x332   :  { %v4463_v49 = vpop.eup %4462  ;;  %4224 = vmatprep.subr.mxu1 %v4622_v12 }
 0x333   :  { %v884_v50 = vsel %vm223_vm2, %v4463_v49, 0.0 }
 0x334   :  { %885 = vadd.xlane.f32.xlu1 %v884_v50  ;;  %v1147_v1 = vpop.permute.xlu1 %1146  ;;  %v1223_v3 = vpop.permute.xlu0 %1222 }
 0x336   :  { %v4465_v51 = vpop.eup %4464 }
 0x337   :  { %v4467_v52 = vpop.eup %4466  ;;  %v890_v55 = vsel %vm223_vm2, %v4465_v51, 0.0 }
 0x338   :  { %891 = vadd.xlane.f32.xlu1 %v890_v55  ;;  %v887_v56 = vsel %vm223_vm2, %v4467_v52, 0.0  ;;  %v1299_v4 = vpop.permute.xlu1 %1298 }
 0x339   :  { %888 = vadd.xlane.f32.xlu0 %v887_v56 }
 0x33a   :  { %v4469_v57 = vpop.eup %4468 }
 0x33b   :  { %v4901_v58 = vpop.eup %4470  ;;  %v896_v59 = vsel %vm223_vm2, %v4469_v57, 0.0 }
 0x33c   :  { %897 = vadd.xlane.f32.xlu1 %v896_v59  ;;  %v893_v60 = vsel %vm223_vm2, %v4901_v58, 0.0 }
 0x33d   :  { %894 = vadd.xlane.f32.xlu0 %v893_v60 }
 0x33e   :  { %v4906_v61 = vpop.eup %4472 }
 0x33f   :  { %v899_v62 = vsel %vm223_vm2, %v4906_v61, 0.0 }
 0x341   :  { %900 = vadd.xlane.f32.xlu0 %v899_v62 }
 0x34d   :  { %1450 = vrot.lane.b32.xlu1 %v4768_v21, %s4628_s25 }
 0x357   :  { %1374 = vrot.lane.b32.xlu0 %v4762_v20, %s4628_s25 }
 0x365   :  { %v883_v6 = vpop.xlane.xlu0 %882 }
 0x366   :  { %4474 = vrcp.f32 %v883_v6 }
 0x369   :  { %v880_v10 = vpop.xlane.xlu1 %879 }
 0x36a   :  { %4476 = vrcp.f32 %v880_v10 }
 0x373   :  { %v4475_v11 = vpop.eup %4474 }
 0x374   :  { %v911_v13 = vmul.f32 %v4475_v11, %v4888_v17 }
 0x376   :  { %4217 = vmatmul.mubr.msk.f32.vlgmr.msra.gmra.mxu1 %vm223_vm2, %v911_v13 }
 0x377   :  { %v4477_v22 = vpop.eup %4476  ;;  %4225 = vmatpush3.msra.mxu1 %v1147_v1  ;;  %4226 = vmatprep.mubr.msk.f32.mxu1 %vm4625_vm1, %v4622_v12 }
 0x378   :  { %v910_v20 = vmul.f32 %v4477_v22, %v4892_v15  ;;  %4234 = vmatprep.subr.mxu1 %v4622_v12 }
 0x37a   :  { %4212 = vmatmul.mubr.msk.f32.vlgmr.msra.gmra.mxu0 %vm223_vm2, %v910_v20 }
 0x37b   :  { %4220 = vmatpush3.msra.mxu0 %v1071_v0  ;;  %4221 = vmatprep.mubr.msk.f32.mxu0 %vm4625_vm1, %v4622_v12 }
 0x37c   :  { %4229 = vmatprep.subr.mxu0 %v4622_v12 }
 0x3bd   :  { %v886_v21 = vpop.xlane.xlu1 %885 }
 0x3be   :  { %4478 = vrcp.f32 %v886_v21 }
 0x3c1   :  { %v892_v23 = vpop.xlane.xlu1 %891 }
 0x3c2   :  { %4480 = vrcp.f32 %v892_v23  ;;  %v889_v14 = vpop.xlane.xlu0 %888 }
 0x3c3   :  { %4482 = vrcp.f32 %v889_v14  ;;  %v1564_v14 = vsub.s32 1, %v4711_v7 }
 0x3c5   :  { %v898_v24 = vpop.xlane.xlu1 %897 }
 0x3c6   :  { %4484 = vrcp.f32 %v898_v24  ;;  %v895_v17 = vpop.xlane.xlu0 %894  ;;  %v1565_v24 = vrot.slane %v4717_v9, %v1564_v14 }
 0x3c7   :  { %4486 = vrcp.f32 %v895_v17 }
 0x3c9   :  { %v1451_v35 = vpop.permute.xlu1 %1450 }
 0x3ca   :  { %v901_v19 = vpop.xlane.xlu0 %900 }
 0x3cb   :  { %v4479_v15 = vpop.eup %4478  ;;  %4488 = vrcp.f32 %v901_v19 }
 0x3cc   :  { %v912_v18 = vmul.f32 %v4479_v15, %v4463_v49  ;;  %v1558_v49 = vld [vmem:[#allocation2] sm:$0xff] }
 0x3ce   :  { %4222 = vmatmul.mubr.msk.f32.vlgmr.msra.gmra.mxu0 %vm223_vm2, %v912_v18  ;;  %v1375_v28 = vpop.permute.xlu0 %1374 }
 0x3cf   :  { %v4481_v16 = vpop.eup %4480  ;;  %4230 = vmatpush3.msra.mxu0 %v1223_v3  ;;  %4231 = vmatprep.mubr.msk.f32.mxu0 %vm4625_vm1, %v4622_v12 }
 0x3d0   :  { %v4483_v25 = vpop.eup %4482  ;;  %4239 = vmatprep.subr.mxu0 %v4622_v12  ;;  %v914_v26 = vmul.f32 %v4481_v16, %v4465_v51 }
 0x3d1   :  { %v913_v27 = vmul.f32 %v4483_v25, %v4467_v52 }
 0x3d2   :  { %4232 = vmatmul.mubr.msk.f32.vlgmr.msra.gmra.mxu0 %vm223_vm2, %v914_v26 }
 0x3d3   :  { %v4485_v29 = vpop.eup %4484  ;;  %4227 = vmatmul.mubr.msk.f32.vlgmr.msra.gmra.mxu1 %vm223_vm2, %v913_v27  ;;  %4240 = vmatpush3.msra.mxu0 %v1375_v28 }
 0x3d4   :  { %v4487_v31 = vpop.eup %4486  ;;  %4235 = vmatpush3.msra.mxu1 %v1299_v4  ;;  %4236 = vmatprep.mubr.msk.f32.mxu1 %vm4625_vm1, %v4622_v12  ;;  %v916_v32 = vmul.f32 %v4485_v29, %v4469_v57 }
 0x3d5   :  { %4241 = vmatprep.mubr.msk.f32.mxu0 %vm4625_vm1, %v4622_v12  ;;  %4244 = vmatprep.subr.mxu1 %v4622_v12  ;;  %v915_v33 = vmul.f32 %v4487_v31, %v4901_v58 }
 0x3d6   :  { %4242 = vmatmul.mubr.msk.f32.vlgmr.msra.gmra.mxu0 %vm223_vm2, %v916_v32  ;;  %4249 = vmatprep.subr.mxu0 %v1561_v46 }
 0x3d7   :  { %4237 = vmatmul.mubr.msk.f32.vlgmr.msra.gmra.mxu1 %vm223_vm2, %v915_v33  ;;  %4250 = vmatpush3.msra.mxu0 %v1561_v46 }
 0x3d8   :  { %v4489_v36 = vpop.eup %4488  ;;  %4245 = vmatpush3.msra.mxu1 %v1451_v35  ;;  %4246 = vmatprep.mubr.msk.f32.mxu1 %vm4625_vm1, %v4622_v12 }
 0x3d9   :  { %v917_v37 = vmul.f32 %v4489_v36, %v4906_v61  ;;  %4251 = vmatprep.subr.mxu0 %v1560_v42 }
 0x3da   :  { %4252 = vmatpush3.msra.mxu0 %v1560_v42 }
 0x3db   :  { %4247 = vmatmul.mubr.msk.f32.vlgmr.msra.gmra.mxu1 %vm223_vm2, %v917_v37  ;;  %4253 = vmatprep.subr.mxu0 %v1559_v47 }
 0x3dc   :  { %4254 = vmatpush3.msra.mxu0 %v1559_v47 }
 0x3dd   :  { %4255 = vmatprep.subr.mxu0 %v1558_v49 }
 0x3de   :  { %4256 = vmatpush3.msra.mxu0 %v1558_v49 }
 0x436   :  { %v1066_v38 = vpop.f32.mrf.mxu1 }
 0x438   :  { %v4218_v39 = vpop.f32.mrf.mxu1 }
 0x439   :  { %v1691_v39 = vld [vmem:[#allocation5 + $0x18] sm:$0xff] }
 0x43a   :  { %v990_v41 = vpop.f32.mrf.mxu0  ;;  %4260 = vmatprep.subr.mxu1 %v1691_v39 }
 0x43b   :  { %4261 = vmatpush3.msra.mxu1 %v1691_v39 }
 0x43c   :  { %v4213_v43 = vpop.f32.mrf.mxu0 }
 0x43d   :  { %v1688_v43 = vld [vmem:[#allocation5] sm:$0xff] }
 0x48e   :  { %v1142_v48 = vpop.f32.mrf.mxu0 }
 0x48f   :  { %1528 = vrot.lane.b32.xlu0 %v1142_v48, %s4620_s9 }
 0x490   :  { %v4223_v50 = vpop.f32.mrf.mxu0 }
 0x492   :  { %v1294_v51 = vpop.f32.mrf.mxu0 }
 0x493   :  { %v1218_v52 = vpop.f32.mrf.mxu1  ;;  %1536 = vrot.lane.b32.xlu0 %v1294_v51, %s4629_s1  ;;  %v1678_v51 = vsub.s32 2, %v4711_v7 }
 0x494   :  { %1530 = vrot.lane.b32.xlu1 %v1218_v52, %s4620_s9  ;;  %v4233_v55 = vpop.f32.mrf.mxu0  ;;  %v1684_v52 = vsub.s32 3, %v4711_v7 }
 0x495   :  { %v4228_v56 = vpop.f32.mrf.mxu1  ;;  %v1679_v55 = vrot.slane %v4717_v9, %v1678_v51 }
 0x496   :  { %v1446_v57 = vpop.f32.mrf.mxu0 }
 0x497   :  { %v1370_v58 = vpop.f32.mrf.mxu1  ;;  %1544 = vrot.lane.b32.xlu0 %v1446_v57, %s4630_s26 }
 0x498   :  { %1538 = vrot.lane.b32.xlu1 %v1370_v58, %s4629_s1  ;;  %v4243_v59 = vpop.f32.mrf.mxu0  ;;  %v1685_v58 = vrot.slane %v4717_v9, %v1684_v52 }
 0x499   :  { %v4238_v60 = vpop.f32.mrf.mxu1 }
 0x49b   :  { %v1522_v61 = vpop.f32.mrf.mxu1 }
 0x49c   :  { %1546 = vrot.lane.b32.xlu1 %v1522_v61, %s4630_s26 }
 0x49d   :  { %v4248_v62 = vpop.f32.mrf.mxu1 }
 0x501   :  { %v1529_v0 = vpop.permute.xlu0 %1528 }
 0x502   :  { %v1550_v4 = vsel %vm223_vm2, %v990_v41, %v1529_v0  ;;  %v1689_v41 = vld [vmem:[#allocation5 + $0x8] sm:$0xff] }
 0x505   :  { %v1537_v1 = vpop.permute.xlu0 %1536 }
 0x506   :  { %v1531_v3 = vpop.permute.xlu1 %1530  ;;  %v1553_v6 = vsel %vm1552_vm3, %v1550_v4, %v1537_v1  ;;  %v1801_v4 = vld [vmem:[%s5367_s5 + $0x30] sm:$0xff] }
 0x507   :  { %v1551_v22 = vsel %vm223_vm2, %v1066_v38, %v1531_v3  ;;  %v1802_v3 = vld [vmem:[%s5367_s5 + $0x38] sm:$0xff] }
 0x508   :  { %4271 = vmatprep.subr.mxu0 %v1802_v3 }
 0x509   :  { %v1545_v10 = vpop.permute.xlu0 %1544 }
 0x50a   :  { %v1539_v11 = vpop.permute.xlu1 %1538  ;;  %v1556_v13 = vsel %vm1555_vm4, %v1553_v6, %v1545_v10  ;;  %v1800_v6 = vld [vmem:[%s5367_s5 + $0x28] sm:$0xff]  ;;  %v1799_v10 = vld [vmem:[%s5367_s5 + $0x20] sm:$0xff] }
 0x50b   :  { %4257 = vmatprep.mubr.msk.f32.mxu0 %vm77_vm0, %v1556_v13  ;;  %v1554_v20 = vsel %vm1552_vm3, %v1551_v22, %v1539_v11  ;;  %v1798_v11 = vld [vmem:[%s5367_s5 + $0x18] sm:$0xff]  ;;  %v1797_v13 = vld [vmem:[%s5367_s5 + $0x10] sm:$0xff]  ;;  %v1796_v22 = vld [vmem:[%s5367_s5 + $0x8] sm:$0xff] }
 0x50e   :  { %v1547_v21 = vpop.permute.xlu1 %1546 }
 0x50f   :  { %v1557_v23 = vsel %vm1555_vm4, %v1554_v20, %v1547_v21  ;;  %v1795_v20 = vld [vmem:[%s5367_s5] sm:$0xff]  ;;  %v1694_v21 = vsub.s32 4, %v4711_v7 }
 0x510   :  { %4258 = vmatmul.mubr.msk.f32.vlgmr.msra.gmra.mxu0 %vm77_vm0, %v1557_v23 }
 0x511   :  { %4272 = vmatpush3.msra.mxu0 %v1802_v3  ;;  %v1695_v23 = vrot.slane %v4717_v9, %v1694_v21 }
 0x512   :  { %4273 = vmatprep.subr.mxu0 %v1801_v4 }
 0x513   :  { %4274 = vmatpush3.msra.mxu0 %v1801_v4 }
 0x514   :  { %4275 = vmatprep.subr.mxu0 %v1800_v6 }
 0x515   :  { %4276 = vmatpush3.msra.mxu0 %v1800_v6 }
 0x516   :  { %4277 = vmatprep.subr.mxu0 %v1799_v10 }
 0x517   :  { %4278 = vmatpush3.msra.mxu0 %v1799_v10 }
 0x518   :  { %4279 = vmatprep.subr.mxu0 %v1798_v11 }
 0x519   :  { %4280 = vmatpush3.msra.mxu0 %v1798_v11  ;;  %v3982_v11 = vld [vmem:[%s5364_s2 + $0x30] sm:$0xff] }
 0x51a   :  { %4281 = vmatprep.subr.mxu0 %v1797_v13 }
 0x51b   :  { %4282 = vmatpush3.msra.mxu0 %v1797_v13  ;;  %v3981_v13 = vld [vmem:[%s5364_s2 + $0x28] sm:$0xff] }
 0x51c   :  { %4283 = vmatprep.subr.mxu0 %v1796_v22 }
 0x51d   :  { %4284 = vmatpush3.msra.mxu0 %v1796_v22  ;;  %v3980_v22 = vld [vmem:[%s5364_s2 + $0x20] sm:$0xff] }
 0x51e   :  { %4285 = vmatprep.subr.mxu0 %v1795_v20 }
 0x51f   :  { %4286 = vmatpush3.msra.mxu0 %v1795_v20 }
 0x520   :  { %4311 = vmatprep.subr.mxu0 %v4622_v12 }
 0x5d0   :  { %v4259_v17 = vpop.f32.mrf.mxu0 }
 0x5d1   :  { %v1644_v19 = vadd.f32 %v4259_v17, %v1565_v24 }
 0x5d2   :  { %v1638_v15 = vpop.f32.mrf.mxu0 }
 0x5d3   :  { %v1639_v18 = vadd.f32 %v1638_v15, %v1565_v24  ;;  %v1648_v16 = vadd.f32 %v1644_v19, %v4707_v5 }
 0x5d5   :  { %v1652_v25 = vsel %vm77_vm0, %v1648_v16, 0.0  ;;  %v1647_v26 = vadd.f32 %v1639_v18, %v4694_v2  ;;  %v1690_v2 = vld [vmem:[#allocation5 + $0x10] sm:$0xff] }
 0x5d6   :  { %1653 = vadd.xlane.f32.xlu1 %v1652_v25  ;;  %4262 = vmatprep.subr.mxu1 %v1690_v2 }
 0x5d7   :  { %v1649_v27 = vsel %vm77_vm0, %v1647_v26, 0.0  ;;  %4263 = vmatpush3.msra.mxu1 %v1690_v2 }
 0x5d8   :  { %1650 = vadd.xlane.f32.xlu0 %v1649_v27  ;;  %4264 = vmatprep.subr.mxu1 %v1689_v41 }
 0x5d9   :  { %4265 = vmatpush3.msra.mxu1 %v1689_v41 }
 0x5da   :  { %4266 = vmatprep.subr.mxu1 %v1688_v43 }
 0x5db   :  { %4267 = vmatpush3.msra.mxu1 %v1688_v43  ;;  %v1805_v43 = vsub.s32 5, %v4711_v7 }
 0x65f   :  { %v1654_v28 = vpop.xlane.xlu1 %1653 }
 0x660   :  { %v1657_v29 = vmul.f32 0.03125, %v1654_v28 }
 0x661   :  { %v1651_v31 = vpop.xlane.xlu0 %1650 }
 0x662   :  { %v1656_v32 = vmul.f32 0.03125, %v1651_v31  ;;  %v1659_v33 = vsub.f32 %v1648_v16, %v1657_v29 }
 0x664   :  { %v1658_v35 = vsub.f32 %v1647_v26, %v1656_v32  ;;  %v1661_v38 = vmul.f32 %v1659_v33, %v1659_v33 }
 0x666   :  { %v1660_v36 = vmul.f32 %v1658_v35, %v1658_v35  ;;  %v1665_v5 = vsel %vm77_vm0, %v1661_v38, 0.0 }
 0x668   :  { %v1662_v37 = vsel %vm77_vm0, %v1660_v36, 0.0 }
 0x669   :  { %1663 = vadd.xlane.f32.xlu0 %v1662_v37 }
 0x66d   :  { %1666 = vadd.xlane.f32.xlu0 %v1665_v5 }
 0x6f2   :  { %v1664_v46 = vpop.xlane.xlu0 %1663 }
 0x6f3   :  { %v1668_v42 = vmul.f32 0.03125, %v1664_v46  ;;  %v1806_v46 = vrot.slane %v4717_v9, %v1805_v43 }
 0x6f5   :  { %v1670_v47 = vadd.f32 1e-12, %v1668_v42 }
 0x6f6   :  { %v1667_v48 = vpop.xlane.xlu0 %1666 }
 0x6f7   :  { %4490 = vrsqrt.f32 %v1670_v47  ;;  %v1669_v49 = vmul.f32 0.03125, %v1667_v48 }
 0x6f9   :  { %v1671_v50 = vadd.f32 1e-12, %v1669_v49 }
 0x6fb   :  { %4492 = vrsqrt.f32 %v1671_v50 }
 0x704   :  { %v4491_v56 = vpop.eup %4490 }
 0x705   :  { %v1674_v57 = vmul.f32 %v4491_v56, %v1658_v35 }
 0x707   :  { %v1680_v59 = vmul.f32 %v1679_v55, %v1674_v57 }
 0x708   :  { %v4493_v60 = vpop.eup %4492 }
 0x709   :  { %v1675_v61 = vmul.f32 %v4493_v60, %v1659_v33  ;;  %v4974_v62 = vadd.f32 %v1685_v58, %v1680_v59 }
 0x70b   :  { %v1681_v0 = vmul.f32 %v1679_v55, %v1675_v61  ;;  %4268 = vmatprep.mubr.msk.f32.mxu1 %vm77_vm0, %v4974_v62 }
 0x70d   :  { %v4978_v1 = vadd.f32 %v1685_v58, %v1681_v0 }
 0x70f   :  { %4269 = vmatmul.mubr.msk.f32.vlgmr.msra.gmra.mxu1 %vm77_vm0, %v4978_v1 }
 0x7cf   :  { %v4270_v24 = vpop.f32.mrf.mxu1 }
 0x7d0   :  { %v1774_v17 = vadd.f32 %v4270_v24, %v1695_v23 }
 0x7d1   :  { %v1768_v19 = vpop.f32.mrf.mxu1 }
 0x7d2   :  { %v1780_v15 = vmul.f32 0.044715, %v1774_v17  ;;  %v1769_v18 = vadd.f32 %v1768_v19, %v1695_v23  ;;  %v1778_v39 = vmul.f32 0.5, %v1774_v17 }
 0x7d4   :  { %v1782_v16 = vmul.f32 %v1780_v15, %v1774_v17  ;;  %v1779_v25 = vmul.f32 0.044715, %v1769_v18  ;;  %v1777_v38 = vmul.f32 0.5, %v1769_v18 }
 0x7d6   :  { %v1784_v26 = vmul.f32 %v1782_v16, %v1774_v17  ;;  %v1781_v27 = vmul.f32 %v1779_v25, %v1769_v18 }
 0x7d8   :  { %v1786_v28 = vadd.f32 %v1784_v26, %v1774_v17  ;;  %v1783_v29 = vmul.f32 %v1781_v27, %v1769_v18  ;;  %v1925_v26 = vsub.s32 7, %v4711_v7 }
 0x7da   :  { %v1788_v31 = vmul.f32 0.7978846, %v1786_v28  ;;  %v1785_v32 = vadd.f32 %v1783_v29, %v1769_v18  ;;  %v1919_v18 = vsub.s32 6, %v4711_v7  ;;  %v3747_v7 = vld [vmem:[%s5369_s7 + $0x30] sm:$0xff] }
 0x7dc   :  { %4494 = vtanh.f32 %v1788_v31  ;;  %v1787_v33 = vmul.f32 0.7978846, %v1785_v32  ;;  %v1920_v25 = vrot.slane %v4717_v9, %v1919_v18  ;;  %v1926_v32 = vrot.slane %v4717_v9, %v1925_v26 }
 0x7de   :  { %4496 = vtanh.f32 %v1787_v33 }
 0x7e9   :  { %v4495_v35 = vpop.eup %4494 }
 0x7ea   :  { %v1792_v37 = vadd.f32 1.0, %v4495_v35 }
 0x7eb   :  { %v4497_v36 = vpop.eup %4496 }
 0x7ec   :  { %v1791_v5 = vadd.f32 1.0, %v4497_v36  ;;  %v1794_v41 = vmul.f32 %v1792_v37, %v1778_v39  ;;  %v5059_v37 = vld [vmem:[%s5368_s6 + $0x8] sm:$0xff] }
 0x7ed   :  { %v1939_v9 = vrot.slane %v5059_v37, %v75_v8 }
 0x7ee   :  { %v1793_v2 = vmul.f32 %v1791_v5, %v1777_v38 }
 0x7f0   :  { %4287 = vmatprep.mubr.msk.f32.mxu0 %vm1807_vm5, %v1793_v2 }
 0x7f1   :  { %4288 = vmatmul.mubr.msk.f32.vlgmr.msra.gmra.mxu0 %vm1807_vm5, %v1794_v41 }
 0x7f2   :  { %4313 = vmatprep.mubr.msk.f32.mxu0 %vm4625_vm1, %v4622_v12 }
 0x8b1   :  { %v4289_v42 = vpop.f32.mrf.mxu0 }
 0x8b2   :  { %v1886_v47 = vadd.f32 %v4289_v42, %v1806_v46 }
 0x8b3   :  { %v1880_v48 = vpop.f32.mrf.mxu0 }
 0x8b4   :  { %v1881_v49 = vadd.f32 %v1880_v48, %v1806_v46  ;;  %v1890_v50 = vadd.f32 %v1886_v47, %v4978_v1 }
 0x8b6   :  { %v1894_v55 = vsel %vm77_vm0, %v1890_v50, 0.0  ;;  %v1889_v56 = vadd.f32 %v1881_v49, %v4974_v62  ;;  %v3983_v62 = vld [vmem:[%s5364_s2 + $0x38] sm:$0xff] }
 0x8b7   :  { %1895 = vadd.xlane.f32.xlu0 %v1894_v55  ;;  %4290 = vmatprep.subr.mxu1 %v3983_v62 }
 0x8b8   :  { %v1891_v57 = vsel %vm77_vm0, %v1889_v56, 0.0  ;;  %4291 = vmatpush3.msra.mxu1 %v3983_v62 }
 0x8b9   :  { %1892 = vadd.xlane.f32.xlu1 %v1891_v57  ;;  %4292 = vmatprep.subr.mxu1 %v3982_v11 }
 0x8ba   :  { %4293 = vmatpush3.msra.mxu1 %v3982_v11 }
 0x8bb   :  { %4294 = vmatprep.subr.mxu1 %v3981_v13 }
 0x8bc   :  { %4295 = vmatpush3.msra.mxu1 %v3981_v13 }
 0x8bd   :  { %4296 = vmatprep.subr.mxu1 %v3980_v22 }
 0x8be   :  { %4297 = vmatpush3.msra.mxu1 %v3980_v22 }
 0x8bf   :  { %4301 = vmatprep.subr.mxu1 %v4622_v12 }
 0x940   :  { %v1896_v58 = vpop.xlane.xlu0 %1895 }
 0x941   :  { %v1898_v59 = vmul.f32 0.03125, %v1896_v58 }
 0x942   :  { %v1893_v60 = vpop.xlane.xlu1 %1892 }
 0x943   :  { %v1900_v61 = vsub.f32 %v1890_v50, %v1898_v59  ;;  %v1897_v0 = vmul.f32 0.03125, %v1893_v60 }
 0x945   :  { %v1899_v3 = vsub.f32 %v1889_v56, %v1897_v0  ;;  %v1902_v4 = vmul.f32 %v1900_v61, %v1900_v61 }
 0x947   :  { %v1906_v6 = vsel %vm77_vm0, %v1902_v4, 0.0  ;;  %v1901_v10 = vmul.f32 %v1899_v3, %v1899_v3 }
 0x948   :  { %1907 = vadd.xlane.f32.xlu0 %v1906_v6 }
 0x949   :  { %v1903_v1 = vsel %vm77_vm0, %v1901_v10, 0.0 }
 0x94a   :  { %1904 = vadd.xlane.f32.xlu1 %v1903_v1 }
 0x9d1   :  { %v1908_v20 = vpop.xlane.xlu0 %1907 }
 0x9d2   :  { %v1910_v23 = vmul.f32 0.03125, %v1908_v20 }
 0x9d3   :  { %v1905_v24 = vpop.xlane.xlu1 %1904 }
 0x9d4   :  { %v1912_v17 = vadd.f32 1e-12, %v1910_v23  ;;  %v1909_v19 = vmul.f32 0.03125, %v1905_v24 }
 0x9d6   :  { %4498 = vrsqrt.f32 %v1912_v17  ;;  %v1911_v15 = vadd.f32 1e-12, %v1909_v19 }
 0x9d8   :  { %4500 = vrsqrt.f32 %v1911_v15 }
 0x9e3   :  { %v4499_v16 = vpop.eup %4498 }
 0x9e4   :  { %v1916_v27 = vmul.f32 %v4499_v16, %v1900_v61 }
 0x9e5   :  { %v4501_v28 = vpop.eup %4500 }
 0x9e6   :  { %v1915_v29 = vmul.f32 %v4501_v28, %v1899_v3  ;;  %v1922_v31 = vmul.f32 %v1920_v25, %v1916_v27 }
 0x9e8   :  { %v1921_v33 = vmul.f32 %v1920_v25, %v1915_v29  ;;  %v5048_v36 = vadd.f32 %v1926_v32, %v1922_v31 }
 0x9ea   :  { %v5046_v35 = vadd.f32 %v1926_v32, %v1921_v33 }
 0x9ec   :  { %4298 = vmatprep.mubr.msk.f32.mxu1 %vm77_vm0, %v5046_v35 }
 0x9ed   :  { %4299 = vmatmul.mubr.msk.f32.vlgmr.msra.gmra.mxu1 %vm77_vm0, %v5048_v36 }
 0x9ee   :  { %4303 = vmatprep.mubr.msk.f32.mxu1 %vm4625_vm1, %v4622_v12 }
 0xaad   :  { %v4300_v38 = vpop.f32.mrf.mxu1 }
 0xaae   :  { %v5064_v5 = vadd.f32 %v4300_v38, %v1939_v9 }
 0xaaf   :  { %v2012_v39 = vpop.f32.mrf.mxu1 }
 0xab0   :  { %v5066_v2 = vadd.f32 %v2012_v39, %v1939_v9  ;;  %2025 = vrot.lane.b32.xlu0 %v5064_v5, %s4624_s29 }
 0xab2   :  { %2023 = vrot.lane.b32.xlu1 %v5066_v2, %s4624_s29 }
 0xab4   :  { %2031 = vrot.lane.b32.xlu0 %v5066_v2, %s4626_s30 }
 0xab6   :  { %2027 = vrot.lane.b32.xlu1 %v5066_v2, %s4623_s0 }
 0xab8   :  { %2035 = vrot.lane.b32.xlu0 %v5066_v2, %s4627_s10 }
 0xaba   :  { %2029 = vrot.lane.b32.xlu1 %v5064_v5, %s4623_s0 }
 0xabe   :  { %2033 = vrot.lane.b32.xlu1 %v5064_v5, %s4626_s30 }
 0xac2   :  { %2111 = vrot.lane.b32.xlu1 %v5064_v5, %s4627_s10 }
 0xb22   :  { %v5084_v8 = vpop.permute.xlu0 %2025 }
 0xb23   :  { %2263 = vrot.lane.b32.xlu1 %v5084_v8, %s4627_s10 }
 0xb24   :  { %v5088_v41 = vpop.permute.xlu1 %2023 }
 0xb25   :  { %2187 = vrot.lane.b32.xlu0 %v5088_v41, %s4627_s10 }
 0xb26   :  { %v5092_v46 = vpop.permute.xlu0 %2031 }
 0xb28   :  { %v5094_v42 = vpop.permute.xlu1 %2027 }
 0xb29   :  { %2339 = vrot.lane.b32.xlu0 %v5094_v42, %s4627_s10 }
 0xb2a   :  { %v2036_v47 = vpop.permute.xlu0 %2035 }
 0xb2b   :  { %4302 = vmatpush3.xpose.msk.msra.mxu1 %vm223_vm2, %v2036_v47 }
 0xb2c   :  { %v5099_v48 = vpop.permute.xlu1 %2029  ;;  %4306 = vmatprep.subr.mxu1 %v4622_v12 }
 0xb2d   :  { %2491 = vrot.lane.b32.xlu0 %v5092_v46, %s4627_s10  ;;  %2415 = vrot.lane.b32.xlu1 %v5099_v48, %s4627_s10 }
 0xb2e   :  { %4304 = vmatmul.mubr.msk.f32.vlgmr.msra.gmra.mxu1 %vm223_vm2, %v5066_v2 }
 0xb2f   :  { %4308 = vmatprep.mubr.msk.f32.mxu1 %vm4625_vm1, %v4622_v12 }
 0xb30   :  { %v5110_v49 = vpop.permute.xlu1 %2033 }
 0xb31   :  { %2567 = vrot.lane.b32.xlu1 %v5110_v49, %s4627_s10 }
 0xb34   :  { %v2112_v50 = vpop.permute.xlu1 %2111 }
 0xb35   :  { %4307 = vmatpush3.xpose.msk.msra.mxu1 %vm223_vm2, %v2112_v50 }
 0xb36   :  { %4316 = vmatprep.subr.mxu1 %v4622_v12 }
 0xb38   :  { %4309 = vmatmul.mubr.msk.f32.vlgmr.msra.gmra.mxu1 %vm223_vm2, %v5064_v5 }
 0xb39   :  { %4318 = vmatprep.mubr.msk.f32.mxu1 %vm4625_vm1, %v4622_v12 }
 0xb95   :  { %v2264_v55 = vpop.permute.xlu1 %2263 }
 0xb96   :  { %4317 = vmatpush3.xpose.msk.msra.mxu1 %vm223_vm2, %v2264_v55 }
 0xb97   :  { %v2188_v56 = vpop.permute.xlu0 %2187  ;;  %4326 = vmatprep.subr.mxu1 %v4622_v12 }
 0xb98   :  { %4312 = vmatpush3.xpose.msk.msra.mxu0 %vm223_vm2, %v2188_v56 }
 0xb99   :  { %4319 = vmatmul.mubr.msk.f32.vlgmr.msra.gmra.mxu1 %vm223_vm2, %v5084_v8  ;;  %4321 = vmatprep.subr.mxu0 %v4622_v12 }
 0xb9a   :  { %4328 = vmatprep.mubr.msk.f32.mxu1 %vm4625_vm1, %v4622_v12 }
 0xb9b   :  { %4314 = vmatmul.mubr.msk.f32.vlgmr.msra.gmra.mxu0 %vm223_vm2, %v5088_v41  ;;  %v2340_v57 = vpop.permute.xlu0 %2339 }
 0xb9c   :  { %4322 = vmatpush3.xpose.msk.msra.mxu0 %vm223_vm2, %v2340_v57  ;;  %4323 = vmatprep.mubr.msk.f32.mxu0 %vm4625_vm1, %v4622_v12 }
 0xb9d   :  { %4331 = vmatprep.subr.mxu0 %v4622_v12 }
 0xb9f   :  { %4324 = vmatmul.mubr.msk.f32.vlgmr.msra.gmra.mxu0 %vm223_vm2, %v5094_v42  ;;  %v2492_v58 = vpop.permute.xlu0 %2491  ;;  %v2416_v59 = vpop.permute.xlu1 %2415 }
 0xba0   :  { %4327 = vmatpush3.xpose.msk.msra.mxu1 %vm223_vm2, %v2416_v59  ;;  %4332 = vmatpush3.xpose.msk.msra.mxu0 %vm223_vm2, %v2492_v58 }
 0xba1   :  { %4333 = vmatprep.mubr.msk.f32.mxu0 %vm4625_vm1, %v4622_v12  ;;  %4336 = vmatprep.subr.mxu1 %v4622_v12 }
 0xba2   :  { %4341 = vmatprep.subr.mxu0 %v4622_v12 }
 0xba3   :  { %4329 = vmatmul.mubr.msk.f32.vlgmr.msra.gmra.mxu1 %vm223_vm2, %v5099_v48  ;;  %4334 = vmatmul.mubr.msk.f32.vlgmr.msra.gmra.mxu0 %vm223_vm2, %v5092_v46  ;;  %v2568_v60 = vpop.permute.xlu1 %2567 }
 0xba4   :  { %4337 = vmatpush3.xpose.msk.msra.mxu1 %vm223_vm2, %v2568_v60  ;;  %4338 = vmatprep.mubr.msk.f32.mxu1 %vm4625_vm1, %v4622_v12 }
 0xba5   :  { %4346 = vmatprep.subr.mxu1 %v4622_v12  ;;  %4343 = vmatprep.mubr.msk.f32.mxu0 %vm4625_vm1, %v4622_v12 }
 0xba7   :  { %4339 = vmatmul.mubr.msk.f32.vlgmr.msra.gmra.mxu1 %vm223_vm2, %v5110_v49 }
 0xba8   :  { %4348 = vmatprep.mubr.msk.f32.mxu1 %vm4625_vm1, %v4622_v12 }
 0xbee   :  { %v2107_v61 = vpop.f32.mrf.mxu1 }
 0xbef   :  { %v2108_v0 = vadd.f32 %v4823_v30, %v2107_v61 }
 0xbf0   :  { %v4305_v3 = vpop.f32.mrf.mxu1 }
 0xbf1   :  { %v2643_v4 = vsel %vm223_vm2, %v2108_v0, -inf }
 0xbf2   :  { %2644 = vmax.xlane.f32.xlu0 %v2643_v4 }
 0xbf8   :  { %v2183_v6 = vpop.f32.mrf.mxu1 }
 0xbf9   :  { %v2184_v10 = vadd.f32 %v4829_v34, %v2183_v6 }
 0xbfa   :  { %v4310_v1 = vpop.f32.mrf.mxu1 }
 0xbfb   :  { %v2646_v62 = vsel %vm223_vm2, %v2184_v10, -inf }
 0xbfc   :  { %2647 = vmax.xlane.f32.xlu1 %v2646_v62 }
 0xc59   :  { %v2335_v11 = vpop.f32.mrf.mxu1 }
 0xc5a   :  { %v2336_v24 = vadd.f32 %v4843_v44, %v2335_v11 }
 0xc5b   :  { %v2259_v13 = vpop.f32.mrf.mxu0  ;;  %v4320_v22 = vpop.f32.mrf.mxu1 }
 0xc5c   :  { %v2260_v20 = vadd.f32 %v4837_v40, %v2259_v13  ;;  %v2652_v16 = vsel %vm223_vm2, %v2336_v24, -inf }
 0xc5d   :  { %v4315_v23 = vpop.f32.mrf.mxu0 }
 0xc5e   :  { %v2649_v30 = vsel %vm223_vm2, %v2260_v20, -inf }
 0xc5f   :  { %2650 = vmax.xlane.f32.xlu0 %v2649_v30  ;;  %v2411_v17 = vpop.f32.mrf.mxu0 }
 0xc60   :  { %v2412_v19 = vadd.f32 %v4848_v45, %v2411_v17 }
 0xc61   :  { %v4325_v15 = vpop.f32.mrf.mxu0 }
 0xc62   :  { %v2655_v34 = vsel %vm223_vm2, %v2412_v19, -inf }
 0xc63   :  { %v2563_v25 = vpop.f32.mrf.mxu0  ;;  %2656 = vmax.xlane.f32.xlu1 %v2655_v34  ;;  %2653 = vmax.xlane.f32.xlu0 %v2652_v16  ;;  %v2487_v27 = vpop.f32.mrf.mxu1 }
 0xc64   :  { %v2564_v40 = vadd.f32 %v4861_v54, %v2563_v25  ;;  %v2488_v28 = vadd.f32 %v4856_v53, %v2487_v27 }
 0xc65   :  { %v4330_v44 = vpop.f32.mrf.mxu1  ;;  %v4335_v29 = vpop.f32.mrf.mxu0 }
 0xc66   :  { %v2661_v31 = vsel %vm223_vm2, %v2564_v40, -inf  ;;  %v2658_v32 = vsel %vm223_vm2, %v2488_v28, -inf }
 0xc67   :  { %2662 = vmax.xlane.f32.xlu1 %v2661_v31  ;;  %2659 = vmax.xlane.f32.xlu0 %v2658_v32  ;;  %v2639_v45 = vpop.f32.mrf.mxu1 }
 0xc68   :  { %v2640_v33 = vadd.f32 %v4870_v63, %v2639_v45 }
 0xc69   :  { %v4340_v9 = vpop.f32.mrf.mxu1 }
 0xc6a   :  { %v2664_v38 = vsel %vm223_vm2, %v2640_v33, -inf }
 0xc6b   :  { %2665 = vmax.xlane.f32.xlu0 %v2664_v38 }
 0xc78   :  { %2731 = vrot.lane.b32.xlu1 %v5066_v2, %s4628_s25 }
 0xc7b   :  { %v2645_v63 = vpop.xlane.xlu0 %2644 }
 0xc7c   :  { %2883 = vrot.lane.b32.xlu1 %v5088_v41, %s4628_s25  ;;  %v2667_v39 = vsub.f32 %v2108_v0, %v2645_v63 }
 0xc7e   :  { %v2675_v47 = vmul.f32 1.442695, %v2667_v39 }
 0xc80   :  { %2959 = vrot.lane.b32.xlu1 %v5084_v8, %s4628_s25 }
 0xc81   :  { %2807 = vrot.lane.b32.xlu0 %v5064_v5, %s4628_s25 }
 0xc84   :  { %3111 = vrot.lane.b32.xlu1 %v5099_v48, %s4628_s25 }
 0xc85   :  { %3035 = vrot.lane.b32.xlu0 %v5094_v42, %s4628_s25  ;;  %v2648_v53 = vpop.xlane.xlu1 %2647 }
 0xc86   :  { %v2668_v54 = vsub.f32 %v2184_v10, %v2648_v53 }
 0xc88   :  { %v2677_v2 = vmul.f32 1.442695, %v2668_v54 }
 0xc8a   :  { %4502 = vpow2.f32 %v2677_v2 }
 0xc8b   :  { %4504 = vpow2.f32 %v2675_v47 }
 0xc97   :  { %v5184_v41 = vpop.eup %4502 }
 0xc98   :  { %v2694_v8 = vsel %vm223_vm2, %v5184_v41, 0.0  ;;  %v5188_v5 = vpop.eup %4504 }
 0xc99   :  { %v2691_v48 = vsel %vm223_vm2, %v5188_v5, 0.0 }
 0xca4   :  { %2695 = vadd.xlane.f32.xlu0 %v2694_v8 }
 0xca8   :  { %2692 = vadd.xlane.f32.xlu1 %v2691_v48 }
 0xce8   :  { %v2651_v42 = vpop.xlane.xlu0 %2650 }
 0xce9   :  { %v2669_v50 = vsub.f32 %v2260_v20, %v2651_v42 }
 0xceb   :  { %v2679_v55 = vmul.f32 1.442695, %v2669_v50 }
 0xcec   :  { %v2654_v56 = vpop.xlane.xlu0 %2653  ;;  %v2657_v57 = vpop.xlane.xlu1 %2656 }
 0xced   :  { %4506 = vpow2.f32 %v2679_v55  ;;  %v2670_v58 = vsub.f32 %v2336_v24, %v2654_v56  ;;  %v2671_v59 = vsub.f32 %v2412_v19, %v2657_v57 }
 0xcef   :  { %v2681_v60 = vmul.f32 1.442695, %v2670_v58  ;;  %v2683_v61 = vmul.f32 1.442695, %v2671_v59 }
 0xcf0   :  { %v2660_v0 = vpop.xlane.xlu0 %2659  ;;  %v2663_v3 = vpop.xlane.xlu1 %2662 }
 0xcf1   :  { %4508 = vpow2.f32 %v2681_v60  ;;  %v2672_v4 = vsub.f32 %v2488_v28, %v2660_v0  ;;  %v2673_v6 = vsub.f32 %v2564_v40, %v2663_v3 }
 0xcf2   :  { %4510 = vpow2.f32 %v2683_v61 }
 0xcf3   :  { %v2685_v10 = vmul.f32 1.442695, %v2672_v4  ;;  %v2687_v1 = vmul.f32 1.442695, %v2673_v6 }
 0xcf4   :  { %v2666_v62 = vpop.xlane.xlu0 %2665  ;;  %v2732_v11 = vpop.permute.xlu1 %2731 }
 0xcf5   :  { %4512 = vpow2.f32 %v2685_v10  ;;  %v2674_v13 = vsub.f32 %v2640_v33, %v2666_v62  ;;  %4342 = vmatpush3.msra.mxu0 %v2732_v11  ;;  %v3372_v62 = vld [vmem:[#allocation2 + $0x30] sm:$0xff]  ;;  %v3371_v11 = vld [vmem:[#allocation2 + $0x28] sm:$0xff] }
 0xcf6   :  { %4514 = vpow2.f32 %v2687_v1  ;;  %4351 = vmatprep.subr.mxu0 %v4622_v12  ;;  %v3373_v1 = vld [vmem:[#allocation2 + $0x38] sm:$0xff] }
 0xcf7   :  { %v2689_v22 = vmul.f32 1.442695, %v2674_v13  ;;  %v3370_v13 = vld [vmem:[#allocation2 + $0x20] sm:$0xff] }
 0xcf8   :  { %v2808_v20 = vpop.permute.xlu0 %2807  ;;  %v2884_v44 = vpop.permute.xlu1 %2883 }
 0xcf9   :  { %4516 = vpow2.f32 %v2689_v22  ;;  %4347 = vmatpush3.msra.mxu1 %v2808_v20 }
 0xcfa   :  { %v4507_v23 = vpop.eup %4506  ;;  %4356 = vmatprep.subr.mxu1 %v4622_v12 }
 0xcfb   :  { %v2697_v24 = vsel %vm223_vm2, %v4507_v23, 0.0 }
 0xcfc   :  { %2698 = vadd.xlane.f32.xlu1 %v2697_v24  ;;  %v2960_v29 = vpop.permute.xlu1 %2959  ;;  %v3036_v31 = vpop.permute.xlu0 %3035 }
 0xcfe   :  { %v4509_v30 = vpop.eup %4508 }
 0xcff   :  { %v4511_v17 = vpop.eup %4510  ;;  %v2700_v19 = vsel %vm223_vm2, %v4509_v30, 0.0 }
 0xd00   :  { %2701 = vadd.xlane.f32.xlu0 %v2700_v19  ;;  %v2703_v15 = vsel %vm223_vm2, %v4511_v17, 0.0  ;;  %v3112_v32 = vpop.permute.xlu1 %3111 }
 0xd01   :  { %2704 = vadd.xlane.f32.xlu1 %v2703_v15 }
 0xd02   :  { %v4513_v34 = vpop.eup %4512 }
 0xd03   :  { %v5197_v16 = vpop.eup %4514  ;;  %v2706_v25 = vsel %vm223_vm2, %v4513_v34, 0.0 }
 0xd04   :  { %2707 = vadd.xlane.f32.xlu0 %v2706_v25  ;;  %v2709_v27 = vsel %vm223_vm2, %v5197_v16, 0.0 }
 0xd05   :  { %2710 = vadd.xlane.f32.xlu1 %v2709_v27 }
 0xd06   :  { %v5202_v40 = vpop.eup %4516 }
 0xd07   :  { %v2712_v28 = vsel %vm223_vm2, %v5202_v40, 0.0 }
 0xd08   :  { %2713 = vadd.xlane.f32.xlu0 %v2712_v28 }
 0xd16   :  { %3263 = vrot.lane.b32.xlu1 %v5110_v49, %s4628_s25 }
 0xd1e   :  { %3187 = vrot.lane.b32.xlu0 %v5092_v46, %s4628_s25 }
 0xd2d   :  { %v2696_v45 = vpop.xlane.xlu0 %2695 }
 0xd2e   :  { %4518 = vrcp.f32 %v2696_v45 }
 0xd31   :  { %v2693_v33 = vpop.xlane.xlu1 %2692 }
 0xd32   :  { %4520 = vrcp.f32 %v2693_v33 }
 0xd3b   :  { %v4519_v9 = vpop.eup %4518 }
 0xd3c   :  { %v2724_v38 = vmul.f32 %v4519_v9, %v5184_v41 }
 0xd3e   :  { %4349 = vmatmul.mubr.msk.f32.vlgmr.msra.gmra.mxu1 %vm223_vm2, %v2724_v38 }
 0xd3f   :  { %v4521_v53 = vpop.eup %4520  ;;  %4357 = vmatpush3.msra.mxu1 %v2960_v29  ;;  %4358 = vmatprep.mubr.msk.f32.mxu1 %vm4625_vm1, %v4622_v12 }
 0xd40   :  { %v2723_v46 = vmul.f32 %v4521_v53, %v5188_v5  ;;  %4366 = vmatprep.subr.mxu1 %v4622_v12 }
 0xd42   :  { %4344 = vmatmul.mubr.msk.f32.vlgmr.msra.gmra.mxu0 %vm223_vm2, %v2723_v46 }
 0xd43   :  { %4352 = vmatpush3.msra.mxu0 %v2884_v44  ;;  %4353 = vmatprep.mubr.msk.f32.mxu0 %vm4625_vm1, %v4622_v12 }
 0xd44   :  { %4361 = vmatprep.subr.mxu0 %v4622_v12 }
 0xd85   :  { %v2699_v49 = vpop.xlane.xlu1 %2698 }
 0xd86   :  { %4522 = vrcp.f32 %v2699_v49  ;;  %v3377_v49 = vrot.slane %v5059_v37, %v1564_v14 }
 0xd89   :  { %v2702_v54 = vpop.xlane.xlu0 %2701 }
 0xd8a   :  { %4524 = vrcp.f32 %v2702_v54  ;;  %v2705_v63 = vpop.xlane.xlu1 %2704 }
 0xd8b   :  { %4526 = vrcp.f32 %v2705_v63 }
 0xd8d   :  { %v2708_v39 = vpop.xlane.xlu0 %2707 }
 0xd8e   :  { %4528 = vrcp.f32 %v2708_v39  ;;  %v2711_v2 = vpop.xlane.xlu1 %2710 }
 0xd8f   :  { %4530 = vrcp.f32 %v2711_v2 }
 0xd91   :  { %v2714_v47 = vpop.xlane.xlu0 %2713 }
 0xd92   :  { %4532 = vrcp.f32 %v2714_v47  ;;  %v3264_v60 = vpop.permute.xlu1 %3263 }
 0xd93   :  { %v4523_v41 = vpop.eup %4522 }
 0xd94   :  { %v2725_v8 = vmul.f32 %v4523_v41, %v4507_v23 }
 0xd95   :  { %v3188_v56 = vpop.permute.xlu0 %3187 }
 0xd96   :  { %4354 = vmatmul.mubr.msk.f32.vlgmr.msra.gmra.mxu0 %vm223_vm2, %v2725_v8 }
 0xd97   :  { %v4525_v5 = vpop.eup %4524  ;;  %4362 = vmatpush3.msra.mxu0 %v3036_v31  ;;  %4363 = vmatprep.mubr.msk.f32.mxu0 %vm4625_vm1, %v4622_v12 }
 0xd98   :  { %v4527_v48 = vpop.eup %4526  ;;  %4371 = vmatprep.subr.mxu0 %v4622_v12  ;;  %v2726_v42 = vmul.f32 %v4525_v5, %v4509_v30 }
 0xd99   :  { %v2727_v50 = vmul.f32 %v4527_v48, %v4511_v17 }
 0xd9a   :  { %4359 = vmatmul.mubr.msk.f32.vlgmr.msra.gmra.mxu1 %vm223_vm2, %v2726_v42 }
 0xd9b   :  { %v4529_v55 = vpop.eup %4528  ;;  %4364 = vmatmul.mubr.msk.f32.vlgmr.msra.gmra.mxu0 %vm223_vm2, %v2727_v50  ;;  %4367 = vmatpush3.msra.mxu1 %v3112_v32 }
 0xd9c   :  { %v4531_v57 = vpop.eup %4530  ;;  %4372 = vmatpush3.msra.mxu0 %v3188_v56  ;;  %4368 = vmatprep.mubr.msk.f32.mxu1 %vm4625_vm1, %v4622_v12  ;;  %v2728_v58 = vmul.f32 %v4529_v55, %v4513_v34 }
 0xd9d   :  { %4373 = vmatprep.mubr.msk.f32.mxu0 %vm4625_vm1, %v4622_v12  ;;  %4376 = vmatprep.subr.mxu1 %v4622_v12  ;;  %v2729_v59 = vmul.f32 %v4531_v57, %v5197_v16 }
 0xd9e   :  { %4369 = vmatmul.mubr.msk.f32.vlgmr.msra.gmra.mxu1 %vm223_vm2, %v2728_v58  ;;  %4381 = vmatprep.subr.mxu0 %v3373_v1 }
 0xd9f   :  { %v4533_v61 = vpop.eup %4532  ;;  %4374 = vmatmul.mubr.msk.f32.vlgmr.msra.gmra.mxu0 %vm223_vm2, %v2729_v59  ;;  %4377 = vmatpush3.msra.mxu1 %v3264_v60  ;;  %v3503_v60 = vld [vmem:[#allocation5 + $0x38] sm:$0xff] }
 0xda0   :  { %4378 = vmatprep.mubr.msk.f32.mxu1 %vm4625_vm1, %v4622_v12  ;;  %v2730_v0 = vmul.f32 %v4533_v61, %v5202_v40  ;;  %4382 = vmatpush3.msra.mxu0 %v3373_v1  ;;  %v3501_v61 = vld [vmem:[#allocation5 + $0x28] sm:$0xff] }
 0xda1   :  { %4383 = vmatprep.subr.mxu0 %v3372_v62  ;;  %4392 = vmatprep.subr.mxu1 %v3503_v60 }
 0xda2   :  { %4379 = vmatmul.mubr.msk.f32.vlgmr.msra.gmra.mxu1 %vm223_vm2, %v2730_v0  ;;  %4384 = vmatpush3.msra.mxu0 %v3372_v62  ;;  %v3500_v0 = vld [vmem:[#allocation5 + $0x20] sm:$0xff] }
 0xda3   :  { %4385 = vmatprep.subr.mxu0 %v3371_v11  ;;  %4393 = vmatpush3.msra.mxu1 %v3503_v60 }
 0xda4   :  { %4386 = vmatpush3.msra.mxu0 %v3371_v11  ;;  %v3490_v11 = vrot.slane %v5059_v37, %v1678_v51  ;;  %v4021_v51 = vld [vmem:[%s5367_s5 + $0x78] sm:$0xff] }
 0xda5   :  { %4387 = vmatprep.subr.mxu0 %v3370_v13 }
 0xda6   :  { %4388 = vmatpush3.msra.mxu0 %v3370_v13 }
 0xda7   :  { %4403 = vmatprep.subr.mxu0 %v4021_v51 }
 0xdfe   :  { %v2879_v3 = vpop.f32.mrf.mxu1 }
 0xe00   :  { %v4350_v4 = vpop.f32.mrf.mxu1 }
 0xe02   :  { %v2803_v6 = vpop.f32.mrf.mxu0 }
 0xe04   :  { %v4345_v10 = vpop.f32.mrf.mxu0 }
 0xe56   :  { %v2955_v22 = vpop.f32.mrf.mxu0 }
 0xe57   :  { %3341 = vrot.lane.b32.xlu0 %v2955_v22, %s4620_s9 }
 0xe58   :  { %v4355_v20 = vpop.f32.mrf.mxu0 }
 0xe59   :  { %v3496_v20 = vrot.slane %v5059_v37, %v1684_v52  ;;  %v4020_v52 = vld [vmem:[%s5367_s5 + $0x70] sm:$0xff] }
 0xe5a   :  { %v3031_v23 = vpop.f32.mrf.mxu1 }
 0xe5b   :  { %v3107_v24 = vpop.f32.mrf.mxu0  ;;  %3343 = vrot.lane.b32.xlu1 %v3031_v23, %s4620_s9 }
 0xe5c   :  { %3349 = vrot.lane.b32.xlu0 %v3107_v24, %s4629_s1  ;;  %v4360_v30 = vpop.f32.mrf.mxu1 }
 0xe5d   :  { %v4365_v17 = vpop.f32.mrf.mxu0 }
 0xe5e   :  { %v3183_v19 = vpop.f32.mrf.mxu1 }
 0xe5f   :  { %v3259_v15 = vpop.f32.mrf.mxu0  ;;  %3351 = vrot.lane.b32.xlu1 %v3183_v19, %s4629_s1  ;;  %s4631_s1 = smov [#allocation7]  }
 0xe60   :  { %3357 = vrot.lane.b32.xlu0 %v3259_v15, %s4630_s26  ;;  %v4370_v34 = vpop.f32.mrf.mxu1 }
 0xe61   :  { %v4375_v16 = vpop.f32.mrf.mxu0  ;;  %v4019_v34 = vld [vmem:[%s5367_s5 + $0x68] sm:$0xff] }
 0xe62   :  { %v3335_v25 = vpop.f32.mrf.mxu1  ;;  %v4018_v16 = vld [vmem:[%s5367_s5 + $0x60] sm:$0xff] }
 0xe63   :  { %3359 = vrot.lane.b32.xlu1 %v3335_v25, %s4630_s26  ;;  %v4017_v25 = vld [vmem:[%s5367_s5 + $0x58] sm:$0xff]  ;;  %s3929_s26 = sshll.u32 %s4631_s1, 4  ;;  %s3930_s26 = int_to_ptr.vmem [resolvable:$true] %s3929_s26 }
 0xe64   :  { %v4380_v27 = vpop.f32.mrf.mxu1  ;;  %p4597_p11 = scmp.lt.s32.totalorder %s3930_s26, %s3930_s26 }
 0xe65   :  { %v4016_v27 = vld [vmem:[%s5367_s5 + $0x50] sm:$0xff] }
 0xec9   :  { %v3342_v40 = vpop.permute.xlu0 %3341 }
 0xeca   :  { %v3363_v29 = vsel %vm223_vm2, %v2803_v6, %v3342_v40  ;;  %v4015_v40 = vld [vmem:[%s5367_s5 + $0x48] sm:$0xff] }
 0xecd   :  { %v3344_v28 = vpop.permute.xlu1 %3343 }
 0xece   :  { %v3350_v44 = vpop.permute.xlu0 %3349  ;;  %v3364_v9 = vsel %vm223_vm2, %v2879_v3, %v3344_v28  ;;  %v4014_v28 = vld [vmem:[%s5367_s5 + $0x40] sm:$0xff] }
 0xecf   :  { %v3365_v32 = vsel %vm1552_vm3, %v3363_v29, %v3350_v44  ;;  %v3507_v44 = vrot.slane %v5059_v37, %v1694_v21 }
 0xed1   :  { %v3352_v31 = vpop.permute.xlu1 %3351 }
 0xed2   :  { %v3358_v45 = vpop.permute.xlu0 %3357  ;;  %v3366_v38 = vsel %vm1552_vm3, %v3364_v9, %v3352_v31 }
 0xed3   :  { %v3367_v33 = vsel %vm1555_vm4, %v3365_v32, %v3358_v45 }
 0xed4   :  { %4389 = vmatprep.mubr.msk.f32.mxu0 %vm77_vm0, %v3367_v33 }
 0xed5   :  { %v3360_v53 = vpop.permute.xlu1 %3359 }
 0xed6   :  { %v3368_v46 = vsel %vm1555_vm4, %v3366_v38, %v3360_v53 }
 0xed7   :  { %4390 = vmatmul.mubr.msk.f32.vlgmr.msra.gmra.mxu0 %vm77_vm0, %v3368_v46 }
 0xed8   :  { %4404 = vmatpush3.msra.mxu0 %v4021_v51 }
 0xed9   :  { %4405 = vmatprep.subr.mxu0 %v4020_v52 }
 0xeda   :  { %4406 = vmatpush3.msra.mxu0 %v4020_v52  ;;  %v3732_v52 = vrot.slane %v5059_v37, %v1919_v18  ;;  %v3745_v18 = vld [vmem:[%s5369_s7 + $0x20] sm:$0xff] }
 0xedb   :  { %4407 = vmatprep.subr.mxu0 %v4019_v34 }
 0xedc   :  { %4408 = vmatpush3.msra.mxu0 %v4019_v34 }
 0xedd   :  { %4409 = vmatprep.subr.mxu0 %v4018_v16 }
 0xede   :  { %4410 = vmatpush3.msra.mxu0 %v4018_v16 }
 0xedf   :  { %4411 = vmatprep.subr.mxu0 %v4017_v25 }
 0xee0   :  { %4412 = vmatpush3.msra.mxu0 %v4017_v25  ;;  %v3738_v25 = vrot.slane %v5059_v37, %v1925_v26  ;;  %v3743_v26 = vld [vmem:[%s5369_s7 + $0x10] sm:$0xff] }
 0xee1   :  { %4413 = vmatprep.subr.mxu0 %v4016_v27 }
 0xee2   :  { %4414 = vmatpush3.msra.mxu0 %v4016_v27 }
 0xee3   :  { %4415 = vmatprep.subr.mxu0 %v4015_v40 }
 0xee4   :  { %4416 = vmatpush3.msra.mxu0 %v4015_v40 }
 0xee5   :  { %4417 = vmatprep.subr.mxu0 %v4014_v28 }
 0xee6   :  { %4418 = vmatpush3.msra.mxu0 %v4014_v28 }
 0xf97   :  { %v4391_v54 = vpop.f32.mrf.mxu0 }
 0xf98   :  { %v3456_v63 = vadd.f32 %v4391_v54, %v3377_v49 }
 0xf99   :  { %v3450_v39 = vpop.f32.mrf.mxu0 }
 0xf9a   :  { %v3451_v2 = vadd.f32 %v3450_v39, %v3377_v49  ;;  %v3460_v47 = vadd.f32 %v3456_v63, %v5048_v36 }
 0xf9c   :  { %v3464_v41 = vsel %vm77_vm0, %v3460_v47, 0.0  ;;  %v3459_v8 = vadd.f32 %v3451_v2, %v5046_v35  ;;  %v3502_v35 = vld [vmem:[#allocation5 + $0x30] sm:$0xff] }
 0xf9d   :  { %3465 = vadd.xlane.f32.xlu1 %v3464_v41  ;;  %4394 = vmatprep.subr.mxu1 %v3502_v35 }
 0xf9e   :  { %v3461_v5 = vsel %vm77_vm0, %v3459_v8, 0.0  ;;  %4395 = vmatpush3.msra.mxu1 %v3502_v35 }
 0xf9f   :  { %3462 = vadd.xlane.f32.xlu0 %v3461_v5  ;;  %4396 = vmatprep.subr.mxu1 %v3501_v61 }
 0xfa0   :  { %4397 = vmatpush3.msra.mxu1 %v3501_v61 }
 0xfa1   :  { %4398 = vmatprep.subr.mxu1 %v3500_v0 }
 0xfa2   :  { %4399 = vmatpush3.msra.mxu1 %v3500_v0 }
 0xfa3   :  { %4422 = vmatprep.subr.mxu1 %v4622_v12 }
0x1026   :  { %v3466_v48 = vpop.xlane.xlu1 %3465 }
0x1027   :  { %v3468_v42 = vmul.f32 0.03125, %v3466_v48 }
0x1028   :  { %v3463_v50 = vpop.xlane.xlu0 %3462 }
0x1029   :  { %v3467_v55 = vmul.f32 0.03125, %v3463_v50  ;;  %v3470_v56 = vsub.f32 %v3460_v47, %v3468_v42 }
0x102b   :  { %v3469_v14 = vsub.f32 %v3459_v8, %v3467_v55  ;;  %v3472_v59 = vmul.f32 %v3470_v56, %v3470_v56  ;;  %v3619_v55 = vrot.slane %v5059_v37, %v1805_v43  ;;  %v3741_v37 = vld [vmem:[%s5369_s7] sm:$0xff] }
0x102d   :  { %v3471_v57 = vmul.f32 %v3469_v14, %v3469_v14  ;;  %v3476_v36 = vsel %vm77_vm0, %v3472_v59, 0.0 }
0x102f   :  { %v3473_v58 = vsel %vm77_vm0, %v3471_v57, 0.0 }
0x1030   :  { %3474 = vadd.xlane.f32.xlu0 %v3473_v58 }
0x1034   :  { %3477 = vadd.xlane.f32.xlu0 %v3476_v36 }
0x10b9   :  { %v3475_v3 = vpop.xlane.xlu0 %3474 }
0x10ba   :  { %v3479_v4 = vmul.f32 0.03125, %v3475_v3 }
0x10bc   :  { %v3481_v6 = vadd.f32 1e-12, %v3479_v4 }
0x10bd   :  { %v3478_v10 = vpop.xlane.xlu0 %3477 }
0x10be   :  { %4534 = vrsqrt.f32 %v3481_v6  ;;  %v3480_v1 = vmul.f32 0.03125, %v3478_v10 }
0x10c0   :  { %v3482_v62 = vadd.f32 1e-12, %v3480_v1 }
0x10c2   :  { %4536 = vrsqrt.f32 %v3482_v62 }
0x10cb   :  { %v4535_v13 = vpop.eup %4534 }
0x10cc   :  { %v3485_v22 = vmul.f32 %v4535_v13, %v3469_v14  ;;  %v3748_v13 = vld [vmem:[%s5369_s7 + $0x38] sm:$0xff] }
0x10ce   :  { %v3491_v23 = vmul.f32 %v3490_v11, %v3485_v22  ;;  %v3746_v22 = vld [vmem:[%s5369_s7 + $0x28] sm:$0xff] }
0x10cf   :  { %v4537_v24 = vpop.eup %4536 }
0x10d0   :  { %v3486_v30 = vmul.f32 %v4537_v24, %v3470_v56  ;;  %v5268_v17 = vadd.f32 %v3496_v20, %v3491_v23  ;;  %v3742_v23 = vld [vmem:[%s5369_s7 + $0x8] sm:$0xff] }
0x10d2   :  { %v3492_v19 = vmul.f32 %v3490_v11, %v3486_v30  ;;  %4400 = vmatprep.mubr.msk.f32.mxu1 %vm77_vm0, %v5268_v17 }
0x10d4   :  { %v3498_v15 = vadd.f32 %v3496_v20, %v3492_v19  ;;  %v3744_v20 = vld [vmem:[%s5369_s7 + $0x18] sm:$0xff] }
0x10d6   :  { %4401 = vmatmul.mubr.msk.f32.vlgmr.msra.gmra.mxu1 %vm77_vm0, %v3498_v15 }
0x10d7   :  { %4430 = vmatprep.mubr.msk.f32.mxu1 %vm4625_vm1, %v4622_v12  ;;  %4423 = vmatpush3.msra.mxu1 %v3748_v13 }
0x10d8   :  { %4424 = vmatprep.subr.mxu1 %v4622_v12 }
0x10d9   :  { %4425 = vmatpush3.msra.mxu1 %v3746_v22 }
0x10da   :  { %4426 = vmatprep.subr.mxu1 %v4622_v12 }
0x10db   :  { %4427 = vmatpush3.msra.mxu1 %v3744_v20 }
0x10dc   :  { %4428 = vmatprep.subr.mxu1 %v4622_v12 }
0x10dd   :  { %4429 = vmatpush3.msra.mxu1 %v3742_v23 }
0x10de   :  { %4433 = vmatprep.subr.mxu1 %v4622_v12 }
0x1196   :  { %v4402_v29 = vpop.f32.mrf.mxu1 }
0x1197   :  { %v3586_v31 = vadd.f32 %v4402_v29, %v3507_v44 }
0x1198   :  { %v3580_v32 = vpop.f32.mrf.mxu1 }
0x1199   :  { %v3592_v45 = vmul.f32 0.044715, %v3586_v31  ;;  %v3581_v33 = vadd.f32 %v3580_v32, %v3507_v44  ;;  %v3590_v48 = vmul.f32 0.5, %v3586_v31 }
0x119b   :  { %v3594_v9 = vmul.f32 %v3592_v45, %v3586_v31  ;;  %v3591_v38 = vmul.f32 0.044715, %v3581_v33  ;;  %v3589_v21 = vmul.f32 0.5, %v3581_v33 }
0x119d   :  { %v3596_v53 = vmul.f32 %v3594_v9, %v3586_v31  ;;  %v3593_v46 = vmul.f32 %v3591_v38, %v3581_v33 }
0x119f   :  { %v3598_v49 = vadd.f32 %v3596_v53, %v3586_v31  ;;  %v3595_v54 = vmul.f32 %v3593_v46, %v3581_v33 }
0x11a1   :  { %v3600_v63 = vmul.f32 0.7978846, %v3598_v49  ;;  %v3597_v39 = vadd.f32 %v3595_v54, %v3581_v33  ;;  %v4024_v33 = vld [vmem:[%s5369_s7 + $0x48] ss:$0 sm:$0xff]  ;;  %v4026_v49 = vld [vmem:[%s5369_s7 + $0x40] ss:$0 sm:$0xff] }
0x11a2   :  { %s4592_s7 = scalar_lea.vmem %s3930_s26, 32 }
0x11a3   :  { %4538 = vtanh.f32 %v3600_v63  ;;  %v3599_v2 = vmul.f32 0.7978846, %v3597_v39  ;;  %p4593_p10 = scmp.ne.s32.totalorder %s3930_s26, %s4592_s7  ;;  %p4598_p12 = scmp.lt.s32.totalorder %s4592_s7, %s4592_s7 }
0x11a5   :  { %4540 = vtanh.f32 %v3599_v2  ;;  %p4599_p13 = por %p4598_p12, %p4597_p11 }
0x11a7   :  { %p4600_p0 = pnand %p4599_p13, %p4593_p10 }
0x11b0   :  { %v4539_v47 = vpop.eup %4538 }
0x11b1   :  { %v3604_v8 = vadd.f32 1.0, %v4539_v47 }
0x11b2   :  { %v4541_v41 = vpop.eup %4540 }
0x11b3   :  { %v3603_v5 = vadd.f32 1.0, %v4541_v41  ;;  %v3606_v50 = vmul.f32 %v3604_v8, %v3590_v48 }
0x11b5   :  { %v3605_v42 = vmul.f32 %v3603_v5, %v3589_v21 }
0x11b7   :  { %4419 = vmatprep.mubr.msk.f32.mxu0 %vm1807_vm5, %v3605_v42 }
0x11b8   :  { %4420 = vmatmul.mubr.msk.f32.vlgmr.msra.gmra.mxu0 %vm1807_vm5, %v3606_v50 }
0x1278   :  { %v4421_v56 = vpop.f32.mrf.mxu0 }
0x1279   :  { %v3698_v14 = vadd.f32 %v4421_v56, %v3619_v55 }
0x127a   :  { %v3692_v57 = vpop.f32.mrf.mxu0 }
0x127b   :  { %v3702_v58 = vadd.f32 %v3698_v14, %v3498_v15  ;;  %v3693_v59 = vadd.f32 %v3692_v57, %v3619_v55 }
0x127d   :  { %v3701_v36 = vadd.f32 %v3693_v59, %v5268_v17  ;;  %v3706_v60 = vsel %vm77_vm0, %v3702_v58, 0.0 }
0x127e   :  { %3707 = vadd.xlane.f32.xlu1 %v3706_v60 }
0x127f   :  { %v3703_v35 = vsel %vm77_vm0, %v3701_v36, 0.0 }
0x1280   :  { %3704 = vadd.xlane.f32.xlu0 %v3703_v35 }
0x1307   :  { %v3708_v61 = vpop.xlane.xlu1 %3707 }
0x1308   :  { %v3710_v0 = vmul.f32 0.03125, %v3708_v61 }
0x1309   :  { %v3705_v3 = vpop.xlane.xlu0 %3704 }
0x130a   :  { %v3712_v4 = vsub.f32 %v3702_v58, %v3710_v0  ;;  %v3709_v6 = vmul.f32 0.03125, %v3705_v3 }
0x130c   :  { %v3711_v10 = vsub.f32 %v3701_v36, %v3709_v6  ;;  %v3714_v43 = vmul.f32 %v3712_v4, %v3712_v4 }
0x130e   :  { %v3718_v1 = vsel %vm77_vm0, %v3714_v43, 0.0  ;;  %v3713_v62 = vmul.f32 %v3711_v10, %v3711_v10 }
0x130f   :  { %3719 = vadd.xlane.f32.xlu1 %v3718_v1 }
0x1310   :  { %v3715_v11 = vsel %vm77_vm0, %v3713_v62, 0.0 }
0x1311   :  { %3716 = vadd.xlane.f32.xlu0 %v3715_v11 }
0x1398   :  { %v3720_v24 = vpop.xlane.xlu1 %3719 }
0x1399   :  { %v3722_v30 = vmul.f32 0.03125, %v3720_v24 }
0x139a   :  { %v3717_v17 = vpop.xlane.xlu0 %3716 }
0x139b   :  { %v3724_v19 = vadd.f32 1e-12, %v3722_v30  ;;  %v3721_v15 = vmul.f32 0.03125, %v3717_v17 }
0x139d   :  { %4542 = vrsqrt.f32 %v3724_v19  ;;  %v3723_v51 = vadd.f32 1e-12, %v3721_v15 }
0x139f   :  { %4544 = vrsqrt.f32 %v3723_v51 }
0x13aa   :  { %v4543_v34 = vpop.eup %4542 }
0x13ab   :  { %v3728_v16 = vmul.f32 %v4543_v34, %v3712_v4 }
0x13ac   :  { %v4545_v27 = vpop.eup %4544 }
0x13ad   :  { %v3727_v40 = vmul.f32 %v4545_v27, %v3711_v10  ;;  %v3734_v28 = vmul.f32 %v3732_v52, %v3728_v16 }
0x13af   :  { %v3733_v44 = vmul.f32 %v3732_v52, %v3727_v40  ;;  %v3740_v29 = vadd.f32 %v3738_v25, %v3734_v28 }
0x13b1   :  { %v3739_v31 = vadd.f32 %v3738_v25, %v3733_v44  ;;  %v3757_v32 = vrot.slane %v3740_v29, 7 }
0x13b3   :  { %v3759_v45 = vsel %vm3758_vm6, %v3757_v32, %v3739_v31 }
0x13b4   :  { %4431 = vmatmul.mubr.msk.f32.vlgmr.msra.gmra.mxu1 %vm77_vm0, %v3759_v45 }
0x13b5   :  { %4441 = vmatprep.mubr.msk.f32.mxu1 %vm4625_vm1, %v4622_v12  ;;  %4434 = vmatpush3.msra.mxu1 %v3747_v7 }
0x13b6   :  { %4435 = vmatprep.subr.mxu1 %v4622_v12 }
0x13b7   :  { %4436 = vmatpush3.msra.mxu1 %v3745_v18 }
0x13b8   :  { %4437 = vmatprep.subr.mxu1 %v4622_v12 }
0x13b9   :  { %4438 = vmatpush3.msra.mxu1 %v3743_v26 }
0x13ba   :  { %4439 = vmatprep.subr.mxu1 %v4622_v12 }
0x13bb   :  { %4440 = vmatpush3.msra.mxu1 %v3741_v37 }
0x1474   :  { %v3828_v9 = vpop.f32.mrf.mxu1 }
0x1475   :  { %v3829_v38 = vadd.f32 %v4024_v33, %v3828_v9 }
0x1476   :  { %v4432_v53 = vpop.f32.mrf.mxu1 }
0x1477   :  { %4546 = vtanh.f32 %v3829_v38 }
0x1484   :  { %v4547_v46 = vpop.eup %4546 }
0x1485   :  { %4442 = vmatmul.mubr.msk.f32.vlgmr.msra.gmra.mxu1 %vm77_vm0, %v4547_v46 }
0x1545   :  { %v3906_v54 = vpop.f32.mrf.mxu1 }
0x1546   :  { %v3907_v63 = vadd.f32 %v4026_v49, %v3906_v54 }
0x1547   :  { %v4443_v12 = vpop.f32.mrf.mxu1 }
0x1548   :  { %v3911_v39 = vsel %vm3910_vm7, %v3907_v63, -inf }
0x1549   :  { %3912 = vmax.xlane.f32.xlu1 %v3911_v39 }
0x15d2   :  { %v3913_v2 = vpop.xlane.xlu1 %3912 }
0x15d3   :  { %v3914_v47 = vsub.f32 %v3907_v63, %v3913_v2 }
0x15d5   :  { %v3915_v41 = vmul.f32 1.442695, %v3914_v47 }
0x15d7   :  { %4548 = vpow2.f32 %v3915_v41 }
0x15e4   :  { %v4549_v8 = vpop.eup %4548 }
0x15e5   :  { %v3917_v21 = vsel %vm3910_vm7, %v4549_v8, 0.0 }
0x15e6   :  { %3918 = vadd.xlane.f32.xlu0 %v3917_v21 }
0x166f   :  { %v3919_v5 = vpop.xlane.xlu0 %3918 }
0x1670   :  { %4550 = vrcp.f32 %v3919_v5 }
0x167d   :  { %v4551_v48 = vpop.eup %4550 }
0x167e   :  { %v3921_v42 = vmul.f32 %v4551_v48, %v4549_v8 }
0x1680   :  { %3922 = vst [vmem:[#allocation7] sm:$0x3] %v3921_v42 }
0x1681   :  { %4603 = shalt.err (!%p4600_p0)
}
0x1682   :  { %3932 = dma.vmem_to_hbm [thread:$0]  %s3930_s26, 32, %s5370_s8, [#allocation4]  }
0x1683   :  { %4616 = dma.done.wait [#allocation4], 32  }
0x1684   :  { %4617 = vsyncadd [#allocation4], 4294967264 }
0x1685   :  { %3936 = vsyncpa [#allocation3], 1 }
0x1686   :  { %3937 = vsyncpa [#allocation6], 1 }
0x1687   :  { %3938 = vsyncpa [#allocation4], 1 }

</bundles_post_ra>
